<compile_context>
chip_gen: v6e
topology: v6e:2x2x1
jax: 0.10.0
libtpu: 0.0.40
codegen_flags: <defaults>
</compile_context>

<pallas_src>
import jax
import jax.numpy as jnp
from jax.experimental import pallas as pl
from jax.experimental.pallas import tpu as pltpu

LAYER_DIMS = [33, 512, 256, 64, 16, 10, 16, 64, 256, 512, 33]
# ReLU after every layer except the encoder output (dim 10) and the final layer.
RELU_FLAGS = [True, True, True, True, False, True, True, True, True, False]
N_LAYERS = len(LAYER_DIMS) - 1


def _round_up(n, m):
    return ((n + m - 1) // m) * m


def mlp_kernel(x_ref, *refs):
    """Whole autoencoder forward for one batch tile.

    All parameters are resident in VMEM; matmuls run on the MXU in bf16 with
    f32 accumulation, bias + ReLU in f32, activations re-cast to bf16 between
    layers.
    """
    out_ref = refs[-1]
    param_refs = refs[:-1]

    h = x_ref[...].astype(jnp.bfloat16)               # (tb, 33) bf16
    for li in range(N_LAYERS):
        w = param_refs[2 * li][...]                    # (in, out) bf16, pinned in VMEM
        b = param_refs[2 * li + 1][...]                # (1, out)  f32,  pinned in VMEM
        acc = jnp.dot(h, w, preferred_element_type=jnp.float32) + b
        if RELU_FLAGS[li]:
            acc = jnp.maximum(acc, 0.0)
        if li < N_LAYERS - 1:
            h = acc.astype(jnp.bfloat16)               # bf16 between layers
        else:
            out_ref[...] = acc.astype(out_ref.dtype)   # final layer stored as f32


def prepare_params(params):
    """One-time parameter prep (call OUTSIDE the hot path).

    params: list of (W (in,out) f32, b (out,) or (1,out) f32) for the 10 layers.
    Returns a flat tuple (w0, b0, ..., w9, b9) with bf16 weights / f32 biases.
    """
    flat = []
    for (w, b) in params:
        flat.append(jnp.asarray(w, jnp.bfloat16))                 # (in, out) bf16
        flat.append(jnp.asarray(b, jnp.float32).reshape(1, -1))   # (1, out)  f32
    return tuple(flat)


def autoencoder_forward(x, flat_params, *, tb=512):
    """x: (B, 33) float32. flat_params: output of prepare_params()."""
    B, F = x.shape
    assert F == LAYER_DIMS[0]
    n_out = LAYER_DIMS[-1]

    # Batch tile: use tb for large batches; otherwise aim for >= 2 grid steps
    # (keeps both v7x TensorCores busy) with tiles a multiple of 16 sublanes.
    if B >= 2 * tb:
        tb_eff = tb
    else:
        tb_eff = min(tb, max(16, _round_up(pl.cdiv(B, 2), 16)))
    Bp = _round_up(B, tb_eff)
    x_in = x if Bp == B else jnp.pad(x, ((0, Bp - B), (0, 0)))

    flops = 2 * Bp * sum(LAYER_DIMS[i] * LAYER_DIMS[i + 1] for i in range(N_LAYERS))
    param_bytes = sum(int(p.size) * p.dtype.itemsize for p in flat_params)
    cost = pl.CostEstimate(
        flops=flops,
        transcendentals=0,
        bytes_accessed=Bp * F * x.dtype.itemsize + Bp * n_out * 4 + param_bytes,
    )

    # Parameters (~0.9 MB bf16 + tiny f32 biases) pinned whole in VMEM: one DMA
    # per call, no per-grid-step blocking. Only the batch tiles are pipelined.
    # TODO(synk): on v7x with the grid sharded across both TCs, VMEM_SHARED for
    # the params would avoid the duplicate per-core copy (minor).
    param_spec = pl.BlockSpec(memory_space=pltpu.MemorySpace.VMEM)
    in_specs = [pl.BlockSpec((tb_eff, F), lambda i: (i, 0))] \
        + [param_spec] * len(flat_params)
    out_specs = pl.BlockSpec((tb_eff, n_out), lambda i: (i, 0))

    out = pl.pallas_call(
        mlp_kernel,
        out_shape=jax.ShapeDtypeStruct((Bp, n_out), jnp.float32),
        grid=(Bp // tb_eff,),
        in_specs=in_specs,
        out_specs=out_specs,
        compiler_params=pltpu.CompilerParams(
            dimension_semantics=("parallel",),      # batch tiles shard across TCs
            vmem_limit_bytes=32 * 1024 * 1024,      # headroom (v5e default is 16 MiB)
        ),
        cost_estimate=cost,
    )(x_in, *flat_params)

    return out if Bp == B else out[:B]


def init_params(key):
    """Deterministic synthetic parameters with the module's shapes (f32 masters)."""
    params = []
    for li in range(N_LAYERS):
        fin, fout = LAYER_DIMS[li], LAYER_DIMS[li + 1]
        key, kw, kb = jax.random.split(key, 3)
        bound = 1.0 / jnp.sqrt(fin)
        w = jax.random.uniform(kw, (fin, fout), jnp.float32, -bound, bound)
        b = jax.random.uniform(kb, (1, fout), jnp.float32, -bound, bound)
        params.append((w, b))
    return params


def reference_forward_bf16(x, flat_params):
    """Same dtype flow as the kernel (bf16 matmul inputs, f32 accum/bias/ReLU)."""
    h = x.astype(jnp.bfloat16)
    for li in range(N_LAYERS):
        w = flat_params[2 * li]
        b = flat_params[2 * li + 1]
        acc = jnp.dot(h, w, preferred_element_type=jnp.float32) + b
        if RELU_FLAGS[li]:
            acc = jnp.maximum(acc, 0.0)
        h = acc.astype(jnp.bfloat16) if li < N_LAYERS - 1 else acc
    return h


def reference_forward_f32(x, params):
    h = x
    for li, (w, b) in enumerate(params):
        h = h @ w + b
        if RELU_FLAGS[li]:
            h = jnp.maximum(h, 0.0)
    return h


if __name__ == "__main__":
    key = jax.random.PRNGKey(0)
    key, kx = jax.random.split(key)
    B = 8
    x = jax.random.normal(kx, (B, LAYER_DIMS[0]), jnp.float32)
    params = init_params(key)
    flat_params = prepare_params(params)   # one-time prep: bf16 weights, f32 biases

    out = autoencoder_forward(x, flat_params)
    out = jax.block_until_ready(out)
    assert out.shape == (B, LAYER_DIMS[-1])
    assert out.dtype == jnp.float32

    # Exact-math check vs. a reference that uses the identical bf16/f32 dtype flow.
    ref_bf16 = reference_forward_bf16(x, flat_params)
    assert jnp.allclose(out, ref_bf16, atol=1e-3, rtol=1e-2)

    # Loose sanity check vs. the pure-f32 PyTorch math (bf16 weights/activations).
    ref_f32 = reference_forward_f32(x, params)
    assert jnp.allclose(out, ref_f32, atol=1e-1, rtol=1e-1)

    print("KERNEL_OK")
</pallas_src>

<mosaic_0001>
module attributes {stable_mosaic.version = 11 : i64} {
  func.func @mlp_kernel(%arg0: i32, %arg1: memref<16x33xf32, #tpu.memory_space<vmem>>, %arg2: memref<33x512xbf16, #tpu.memory_space<vmem>>, %arg3: memref<1x512xf32, #tpu.memory_space<vmem>>, %arg4: memref<512x256xbf16, #tpu.memory_space<vmem>>, %arg5: memref<1x256xf32, #tpu.memory_space<vmem>>, %arg6: memref<256x64xbf16, #tpu.memory_space<vmem>>, %arg7: memref<1x64xf32, #tpu.memory_space<vmem>>, %arg8: memref<64x16xbf16, #tpu.memory_space<vmem>>, %arg9: memref<1x16xf32, #tpu.memory_space<vmem>>, %arg10: memref<16x10xbf16, #tpu.memory_space<vmem>>, %arg11: memref<1x10xf32, #tpu.memory_space<vmem>>, %arg12: memref<10x16xbf16, #tpu.memory_space<vmem>>, %arg13: memref<1x16xf32, #tpu.memory_space<vmem>>, %arg14: memref<16x64xbf16, #tpu.memory_space<vmem>>, %arg15: memref<1x64xf32, #tpu.memory_space<vmem>>, %arg16: memref<64x256xbf16, #tpu.memory_space<vmem>>, %arg17: memref<1x256xf32, #tpu.memory_space<vmem>>, %arg18: memref<256x512xbf16, #tpu.memory_space<vmem>>, %arg19: memref<1x512xf32, #tpu.memory_space<vmem>>, %arg20: memref<512x33xbf16, #tpu.memory_space<vmem>>, %arg21: memref<1x33xf32, #tpu.memory_space<vmem>>, %arg22: memref<16x33xf32, #tpu.memory_space<vmem>>) attributes {dimension_semantics = [#tpu.dimension_semantics<parallel>], iteration_bounds = array<i64: 1>, scalar_prefetch = 0 : i64, scratch_operands = 0 : i64, tpu.core_type = #tpu.core_type<tc>, window_params = [{transform_indices = @transform_0, window_bounds = array<i64: 16, 33>}, {pipeline_mode = #tpu.pipeline_mode<synchronous>, transform_indices = @transform_1, window_bounds = array<i64: 33, 512>}, {pipeline_mode = #tpu.pipeline_mode<synchronous>, transform_indices = @transform_2, window_bounds = array<i64: 1, 512>}, {pipeline_mode = #tpu.pipeline_mode<synchronous>, transform_indices = @transform_3, window_bounds = array<i64: 512, 256>}, {pipeline_mode = #tpu.pipeline_mode<synchronous>, transform_indices = @transform_4, window_bounds = array<i64: 1, 256>}, {pipeline_mode = #tpu.pipeline_mode<synchronous>, transform_indices = @transform_5, window_bounds = array<i64: 256, 64>}, {pipeline_mode = #tpu.pipeline_mode<synchronous>, transform_indices = @transform_6, window_bounds = array<i64: 1, 64>}, {pipeline_mode = #tpu.pipeline_mode<synchronous>, transform_indices = @transform_7, window_bounds = array<i64: 64, 16>}, {pipeline_mode = #tpu.pipeline_mode<synchronous>, transform_indices = @transform_8, window_bounds = array<i64: 1, 16>}, {pipeline_mode = #tpu.pipeline_mode<synchronous>, transform_indices = @transform_9, window_bounds = array<i64: 16, 10>}, {pipeline_mode = #tpu.pipeline_mode<synchronous>, transform_indices = @transform_10, window_bounds = array<i64: 1, 10>}, {pipeline_mode = #tpu.pipeline_mode<synchronous>, transform_indices = @transform_11, window_bounds = array<i64: 10, 16>}, {pipeline_mode = #tpu.pipeline_mode<synchronous>, transform_indices = @transform_12, window_bounds = array<i64: 1, 16>}, {pipeline_mode = #tpu.pipeline_mode<synchronous>, transform_indices = @transform_13, window_bounds = array<i64: 16, 64>}, {pipeline_mode = #tpu.pipeline_mode<synchronous>, transform_indices = @transform_14, window_bounds = array<i64: 1, 64>}, {pipeline_mode = #tpu.pipeline_mode<synchronous>, transform_indices = @transform_15, window_bounds = array<i64: 64, 256>}, {pipeline_mode = #tpu.pipeline_mode<synchronous>, transform_indices = @transform_16, window_bounds = array<i64: 1, 256>}, {pipeline_mode = #tpu.pipeline_mode<synchronous>, transform_indices = @transform_17, window_bounds = array<i64: 256, 512>}, {pipeline_mode = #tpu.pipeline_mode<synchronous>, transform_indices = @transform_18, window_bounds = array<i64: 1, 512>}, {pipeline_mode = #tpu.pipeline_mode<synchronous>, transform_indices = @transform_19, window_bounds = array<i64: 512, 33>}, {pipeline_mode = #tpu.pipeline_mode<synchronous>, transform_indices = @transform_20, window_bounds = array<i64: 1, 33>}, {transform_indices = @transform_21, window_bounds = array<i64: 16, 33>}]} {
    %c0 = arith.constant 0 : index
    %c0_0 = arith.constant 0 : index
    %0 = vector.load %arg1[%c0, %c0_0] : memref<16x33xf32, #tpu.memory_space<vmem>>, vector<16x33xf32>
    %1 = arith.truncf %0 : vector<16x33xf32> to vector<16x33xbf16>
    %c0_1 = arith.constant 0 : index
    %c0_2 = arith.constant 0 : index
    %2 = vector.load %arg2[%c0_1, %c0_2] : memref<33x512xbf16, #tpu.memory_space<vmem>>, vector<33x512xbf16>
    %c0_3 = arith.constant 0 : index
    %c0_4 = arith.constant 0 : index
    %3 = vector.load %arg3[%c0_3, %c0_4] : memref<1x512xf32, #tpu.memory_space<vmem>>, vector<1x512xf32>
    %cst = arith.constant dense<0.000000e+00> : vector<16x512xf32>
    %4 = tpu.matmul %1, %2, %cst {dimension_numbers = #tpu.dot_dimension_numbers<[1], [0], [0], [1], [0, 0, 1, 1], [], []>} : vector<16x33xbf16>, vector<33x512xbf16>, vector<16x512xf32> -> vector<16x512xf32>
    %5 = vector.broadcast %3 : vector<1x512xf32> to vector<16x512xf32>
    %6 = arith.addf %4, %5 : vector<16x512xf32>
    %cst_5 = arith.constant 0.000000e+00 : f32
    %7 = vector.broadcast %cst_5 : f32 to vector<16x512xf32>
    %8 = arith.maximumf %6, %7 : vector<16x512xf32>
    %9 = arith.truncf %8 : vector<16x512xf32> to vector<16x512xbf16>
    %c0_6 = arith.constant 0 : index
    %c0_7 = arith.constant 0 : index
    %10 = vector.load %arg4[%c0_6, %c0_7] : memref<512x256xbf16, #tpu.memory_space<vmem>>, vector<512x256xbf16>
    %c0_8 = arith.constant 0 : index
    %c0_9 = arith.constant 0 : index
    %11 = vector.load %arg5[%c0_8, %c0_9] : memref<1x256xf32, #tpu.memory_space<vmem>>, vector<1x256xf32>
    %cst_10 = arith.constant dense<0.000000e+00> : vector<16x256xf32>
    %12 = tpu.matmul %9, %10, %cst_10 {dimension_numbers = #tpu.dot_dimension_numbers<[1], [0], [0], [1], [0, 0, 1, 1], [], []>} : vector<16x512xbf16>, vector<512x256xbf16>, vector<16x256xf32> -> vector<16x256xf32>
    %13 = vector.broadcast %11 : vector<1x256xf32> to vector<16x256xf32>
    %14 = arith.addf %12, %13 : vector<16x256xf32>
    %cst_11 = arith.constant 0.000000e+00 : f32
    %15 = vector.broadcast %cst_11 : f32 to vector<16x256xf32>
    %16 = arith.maximumf %14, %15 : vector<16x256xf32>
    %17 = arith.truncf %16 : vector<16x256xf32> to vector<16x256xbf16>
    %c0_12 = arith.constant 0 : index
    %c0_13 = arith.constant 0 : index
    %18 = vector.load %arg6[%c0_12, %c0_13] : memref<256x64xbf16, #tpu.memory_space<vmem>>, vector<256x64xbf16>
    %c0_14 = arith.constant 0 : index
    %c0_15 = arith.constant 0 : index
    %19 = vector.load %arg7[%c0_14, %c0_15] : memref<1x64xf32, #tpu.memory_space<vmem>>, vector<1x64xf32>
    %cst_16 = arith.constant dense<0.000000e+00> : vector<16x64xf32>
    %20 = tpu.matmul %17, %18, %cst_16 {dimension_numbers = #tpu.dot_dimension_numbers<[1], [0], [0], [1], [0, 0, 1, 1], [], []>} : vector<16x256xbf16>, vector<256x64xbf16>, vector<16x64xf32> -> vector<16x64xf32>
    %21 = vector.broadcast %19 : vector<1x64xf32> to vector<16x64xf32>
    %22 = arith.addf %20, %21 : vector<16x64xf32>
    %cst_17 = arith.constant 0.000000e+00 : f32
    %23 = vector.broadcast %cst_17 : f32 to vector<16x64xf32>
    %24 = arith.maximumf %22, %23 : vector<16x64xf32>
    %25 = arith.truncf %24 : vector<16x64xf32> to vector<16x64xbf16>
    %c0_18 = arith.constant 0 : index
    %c0_19 = arith.constant 0 : index
    %26 = vector.load %arg8[%c0_18, %c0_19] : memref<64x16xbf16, #tpu.memory_space<vmem>>, vector<64x16xbf16>
    %c0_20 = arith.constant 0 : index
    %c0_21 = arith.constant 0 : index
    %27 = vector.load %arg9[%c0_20, %c0_21] : memref<1x16xf32, #tpu.memory_space<vmem>>, vector<1x16xf32>
    %cst_22 = arith.constant dense<0.000000e+00> : vector<16x16xf32>
    %28 = tpu.matmul %25, %26, %cst_22 {dimension_numbers = #tpu.dot_dimension_numbers<[1], [0], [0], [1], [0, 0, 1, 1], [], []>} : vector<16x64xbf16>, vector<64x16xbf16>, vector<16x16xf32> -> vector<16x16xf32>
    %29 = vector.broadcast %27 : vector<1x16xf32> to vector<16x16xf32>
    %30 = arith.addf %28, %29 : vector<16x16xf32>
    %cst_23 = arith.constant 0.000000e+00 : f32
    %31 = vector.broadcast %cst_23 : f32 to vector<16x16xf32>
    %32 = arith.maximumf %30, %31 : vector<16x16xf32>
    %33 = arith.truncf %32 : vector<16x16xf32> to vector<16x16xbf16>
    %c0_24 = arith.constant 0 : index
    %c0_25 = arith.constant 0 : index
    %34 = vector.load %arg10[%c0_24, %c0_25] : memref<16x10xbf16, #tpu.memory_space<vmem>>, vector<16x10xbf16>
    %c0_26 = arith.constant 0 : index
    %c0_27 = arith.constant 0 : index
    %35 = vector.load %arg11[%c0_26, %c0_27] : memref<1x10xf32, #tpu.memory_space<vmem>>, vector<1x10xf32>
    %cst_28 = arith.constant dense<0.000000e+00> : vector<16x10xf32>
    %36 = tpu.matmul %33, %34, %cst_28 {dimension_numbers = #tpu.dot_dimension_numbers<[1], [0], [0], [1], [0, 0, 1, 1], [], []>} : vector<16x16xbf16>, vector<16x10xbf16>, vector<16x10xf32> -> vector<16x10xf32>
    %37 = vector.broadcast %35 : vector<1x10xf32> to vector<16x10xf32>
    %38 = arith.addf %36, %37 : vector<16x10xf32>
    %39 = arith.truncf %38 : vector<16x10xf32> to vector<16x10xbf16>
    %c0_29 = arith.constant 0 : index
    %c0_30 = arith.constant 0 : index
    %40 = vector.load %arg12[%c0_29, %c0_30] : memref<10x16xbf16, #tpu.memory_space<vmem>>, vector<10x16xbf16>
    %c0_31 = arith.constant 0 : index
    %c0_32 = arith.constant 0 : index
    %41 = vector.load %arg13[%c0_31, %c0_32] : memref<1x16xf32, #tpu.memory_space<vmem>>, vector<1x16xf32>
    %cst_33 = arith.constant dense<0.000000e+00> : vector<16x16xf32>
    %42 = tpu.matmul %39, %40, %cst_33 {dimension_numbers = #tpu.dot_dimension_numbers<[1], [0], [0], [1], [0, 0, 1, 1], [], []>} : vector<16x10xbf16>, vector<10x16xbf16>, vector<16x16xf32> -> vector<16x16xf32>
    %43 = vector.broadcast %41 : vector<1x16xf32> to vector<16x16xf32>
    %44 = arith.addf %42, %43 : vector<16x16xf32>
    %cst_34 = arith.constant 0.000000e+00 : f32
    %45 = vector.broadcast %cst_34 : f32 to vector<16x16xf32>
    %46 = arith.maximumf %44, %45 : vector<16x16xf32>
    %47 = arith.truncf %46 : vector<16x16xf32> to vector<16x16xbf16>
    %c0_35 = arith.constant 0 : index
    %c0_36 = arith.constant 0 : index
    %48 = vector.load %arg14[%c0_35, %c0_36] : memref<16x64xbf16, #tpu.memory_space<vmem>>, vector<16x64xbf16>
    %c0_37 = arith.constant 0 : index
    %c0_38 = arith.constant 0 : index
    %49 = vector.load %arg15[%c0_37, %c0_38] : memref<1x64xf32, #tpu.memory_space<vmem>>, vector<1x64xf32>
    %cst_39 = arith.constant dense<0.000000e+00> : vector<16x64xf32>
    %50 = tpu.matmul %47, %48, %cst_39 {dimension_numbers = #tpu.dot_dimension_numbers<[1], [0], [0], [1], [0, 0, 1, 1], [], []>} : vector<16x16xbf16>, vector<16x64xbf16>, vector<16x64xf32> -> vector<16x64xf32>
    %51 = vector.broadcast %49 : vector<1x64xf32> to vector<16x64xf32>
    %52 = arith.addf %50, %51 : vector<16x64xf32>
    %cst_40 = arith.constant 0.000000e+00 : f32
    %53 = vector.broadcast %cst_40 : f32 to vector<16x64xf32>
    %54 = arith.maximumf %52, %53 : vector<16x64xf32>
    %55 = arith.truncf %54 : vector<16x64xf32> to vector<16x64xbf16>
    %c0_41 = arith.constant 0 : index
    %c0_42 = arith.constant 0 : index
    %56 = vector.load %arg16[%c0_41, %c0_42] : memref<64x256xbf16, #tpu.memory_space<vmem>>, vector<64x256xbf16>
    %c0_43 = arith.constant 0 : index
    %c0_44 = arith.constant 0 : index
    %57 = vector.load %arg17[%c0_43, %c0_44] : memref<1x256xf32, #tpu.memory_space<vmem>>, vector<1x256xf32>
    %cst_45 = arith.constant dense<0.000000e+00> : vector<16x256xf32>
    %58 = tpu.matmul %55, %56, %cst_45 {dimension_numbers = #tpu.dot_dimension_numbers<[1], [0], [0], [1], [0, 0, 1, 1], [], []>} : vector<16x64xbf16>, vector<64x256xbf16>, vector<16x256xf32> -> vector<16x256xf32>
    %59 = vector.broadcast %57 : vector<1x256xf32> to vector<16x256xf32>
    %60 = arith.addf %58, %59 : vector<16x256xf32>
    %cst_46 = arith.constant 0.000000e+00 : f32
    %61 = vector.broadcast %cst_46 : f32 to vector<16x256xf32>
    %62 = arith.maximumf %60, %61 : vector<16x256xf32>
    %63 = arith.truncf %62 : vector<16x256xf32> to vector<16x256xbf16>
    %c0_47 = arith.constant 0 : index
    %c0_48 = arith.constant 0 : index
    %64 = vector.load %arg18[%c0_47, %c0_48] : memref<256x512xbf16, #tpu.memory_space<vmem>>, vector<256x512xbf16>
    %c0_49 = arith.constant 0 : index
    %c0_50 = arith.constant 0 : index
    %65 = vector.load %arg19[%c0_49, %c0_50] : memref<1x512xf32, #tpu.memory_space<vmem>>, vector<1x512xf32>
    %cst_51 = arith.constant dense<0.000000e+00> : vector<16x512xf32>
    %66 = tpu.matmul %63, %64, %cst_51 {dimension_numbers = #tpu.dot_dimension_numbers<[1], [0], [0], [1], [0, 0, 1, 1], [], []>} : vector<16x256xbf16>, vector<256x512xbf16>, vector<16x512xf32> -> vector<16x512xf32>
    %67 = vector.broadcast %65 : vector<1x512xf32> to vector<16x512xf32>
    %68 = arith.addf %66, %67 : vector<16x512xf32>
    %cst_52 = arith.constant 0.000000e+00 : f32
    %69 = vector.broadcast %cst_52 : f32 to vector<16x512xf32>
    %70 = arith.maximumf %68, %69 : vector<16x512xf32>
    %71 = arith.truncf %70 : vector<16x512xf32> to vector<16x512xbf16>
    %c0_53 = arith.constant 0 : index
    %c0_54 = arith.constant 0 : index
    %72 = vector.load %arg20[%c0_53, %c0_54] : memref<512x33xbf16, #tpu.memory_space<vmem>>, vector<512x33xbf16>
    %c0_55 = arith.constant 0 : index
    %c0_56 = arith.constant 0 : index
    %73 = vector.load %arg21[%c0_55, %c0_56] : memref<1x33xf32, #tpu.memory_space<vmem>>, vector<1x33xf32>
    %cst_57 = arith.constant dense<0.000000e+00> : vector<16x33xf32>
    %74 = tpu.matmul %71, %72, %cst_57 {dimension_numbers = #tpu.dot_dimension_numbers<[1], [0], [0], [1], [0, 0, 1, 1], [], []>} : vector<16x512xbf16>, vector<512x33xbf16>, vector<16x33xf32> -> vector<16x33xf32>
    %75 = vector.broadcast %73 : vector<1x33xf32> to vector<16x33xf32>
    %76 = arith.addf %74, %75 : vector<16x33xf32>
    %c0_58 = arith.constant 0 : index
    %c0_59 = arith.constant 0 : index
    %77 = vector.load %arg22[%c0_58, %c0_59] : memref<16x33xf32, #tpu.memory_space<vmem>>, vector<16x33xf32>
    tpu.vector_store %arg22[%c0_58, %c0_59], %76 {strides = array<i32>} : memref<16x33xf32, #tpu.memory_space<vmem>>, vector<16x33xf32>,
    return
  }
  func.func @transform_0(%arg0: i32) -> (i32, i32) {
    %c0_i32 = arith.constant 0 : i32
    %c0_i32_0 = arith.constant 0 : i32
    return %arg0, %c0_i32 : i32, i32
  }
  func.func @transform_1(%arg0: i32) -> (i32, i32) {
    %c0_i32 = arith.constant 0 : i32
    %c0_i32_0 = arith.constant 0 : i32
    %c0_i32_1 = arith.constant 0 : i32
    return %c0_i32, %c0_i32_0 : i32, i32
  }
  func.func @transform_2(%arg0: i32) -> (i32, i32) {
    %c0_i32 = arith.constant 0 : i32
    %c0_i32_0 = arith.constant 0 : i32
    %c0_i32_1 = arith.constant 0 : i32
    return %c0_i32, %c0_i32_0 : i32, i32
  }
  func.func @transform_3(%arg0: i32) -> (i32, i32) {
    %c0_i32 = arith.constant 0 : i32
    %c0_i32_0 = arith.constant 0 : i32
    %c0_i32_1 = arith.constant 0 : i32
    return %c0_i32, %c0_i32_0 : i32, i32
  }
  func.func @transform_4(%arg0: i32) -> (i32, i32) {
    %c0_i32 = arith.constant 0 : i32
    %c0_i32_0 = arith.constant 0 : i32
    %c0_i32_1 = arith.constant 0 : i32
    return %c0_i32, %c0_i32_0 : i32, i32
  }
  func.func @transform_5(%arg0: i32) -> (i32, i32) {
    %c0_i32 = arith.constant 0 : i32
    %c0_i32_0 = arith.constant 0 : i32
    %c0_i32_1 = arith.constant 0 : i32
    return %c0_i32, %c0_i32_0 : i32, i32
  }
  func.func @transform_6(%arg0: i32) -> (i32, i32) {
    %c0_i32 = arith.constant 0 : i32
    %c0_i32_0 = arith.constant 0 : i32
    %c0_i32_1 = arith.constant 0 : i32
    return %c0_i32, %c0_i32_0 : i32, i32
  }
  func.func @transform_7(%arg0: i32) -> (i32, i32) {
    %c0_i32 = arith.constant 0 : i32
    %c0_i32_0 = arith.constant 0 : i32
    %c0_i32_1 = arith.constant 0 : i32
    return %c0_i32, %c0_i32_0 : i32, i32
  }
  func.func @transform_8(%arg0: i32) -> (i32, i32) {
    %c0_i32 = arith.constant 0 : i32
    %c0_i32_0 = arith.constant 0 : i32
    %c0_i32_1 = arith.constant 0 : i32
    return %c0_i32, %c0_i32_0 : i32, i32
  }
  func.func @transform_9(%arg0: i32) -> (i32, i32) {
    %c0_i32 = arith.constant 0 : i32
    %c0_i32_0 = arith.constant 0 : i32
    %c0_i32_1 = arith.constant 0 : i32
    return %c0_i32, %c0_i32_0 : i32, i32
  }
  func.func @transform_10(%arg0: i32) -> (i32, i32) {
    %c0_i32 = arith.constant 0 : i32
    %c0_i32_0 = arith.constant 0 : i32
    %c0_i32_1 = arith.constant 0 : i32
    return %c0_i32, %c0_i32_0 : i32, i32
  }
  func.func @transform_11(%arg0: i32) -> (i32, i32) {
    %c0_i32 = arith.constant 0 : i32
    %c0_i32_0 = arith.constant 0 : i32
    %c0_i32_1 = arith.constant 0 : i32
    return %c0_i32, %c0_i32_0 : i32, i32
  }
  func.func @transform_12(%arg0: i32) -> (i32, i32) {
    %c0_i32 = arith.constant 0 : i32
    %c0_i32_0 = arith.constant 0 : i32
    %c0_i32_1 = arith.constant 0 : i32
    return %c0_i32, %c0_i32_0 : i32, i32
  }
  func.func @transform_13(%arg0: i32) -> (i32, i32) {
    %c0_i32 = arith.constant 0 : i32
    %c0_i32_0 = arith.constant 0 : i32
    %c0_i32_1 = arith.constant 0 : i32
    return %c0_i32, %c0_i32_0 : i32, i32
  }
  func.func @transform_14(%arg0: i32) -> (i32, i32) {
    %c0_i32 = arith.constant 0 : i32
    %c0_i32_0 = arith.constant 0 : i32
    %c0_i32_1 = arith.constant 0 : i32
    return %c0_i32, %c0_i32_0 : i32, i32
  }
  func.func @transform_15(%arg0: i32) -> (i32, i32) {
    %c0_i32 = arith.constant 0 : i32
    %c0_i32_0 = arith.constant 0 : i32
    %c0_i32_1 = arith.constant 0 : i32
    return %c0_i32, %c0_i32_0 : i32, i32
  }
  func.func @transform_16(%arg0: i32) -> (i32, i32) {
    %c0_i32 = arith.constant 0 : i32
    %c0_i32_0 = arith.constant 0 : i32
    %c0_i32_1 = arith.constant 0 : i32
    return %c0_i32, %c0_i32_0 : i32, i32
  }
  func.func @transform_17(%arg0: i32) -> (i32, i32) {
    %c0_i32 = arith.constant 0 : i32
    %c0_i32_0 = arith.constant 0 : i32
    %c0_i32_1 = arith.constant 0 : i32
    return %c0_i32, %c0_i32_0 : i32, i32
  }
  func.func @transform_18(%arg0: i32) -> (i32, i32) {
    %c0_i32 = arith.constant 0 : i32
    %c0_i32_0 = arith.constant 0 : i32
    %c0_i32_1 = arith.constant 0 : i32
    return %c0_i32, %c0_i32_0 : i32, i32
  }
  func.func @transform_19(%arg0: i32) -> (i32, i32) {
    %c0_i32 = arith.constant 0 : i32
    %c0_i32_0 = arith.constant 0 : i32
    %c0_i32_1 = arith.constant 0 : i32
    return %c0_i32, %c0_i32_0 : i32, i32
  }
  func.func @transform_20(%arg0: i32) -> (i32, i32) {
    %c0_i32 = arith.constant 0 : i32
    %c0_i32_0 = arith.constant 0 : i32
    %c0_i32_1 = arith.constant 0 : i32
    return %c0_i32, %c0_i32_0 : i32, i32
  }
  func.func @transform_21(%arg0: i32) -> (i32, i32) {
    %c0_i32 = arith.constant 0 : i32
    %c0_i32_0 = arith.constant 0 : i32
    return %arg0, %c0_i32 : i32, i32
  }
}

</mosaic_0001>

<bundles_post_ra>
// kernel: tpu_custom_call.1
= control target key start
LH: loop header
LB: loop body
LE: loop exit
PB: predicated region body
PF: predicated region fallthrough
CT: control target
= control target key end

     0   :  { %s3922_s0 = inlined_call_operand.hbm [shape: f32[16,33], index: 0, kind: input, shape index: {}]   ;;  %s3923_s1 = inlined_call_operand.hbm [shape: bf16[33,512], index: 1, kind: input, shape index: {}]   ;;  %s3924_s2 = inlined_call_operand.hbm [shape: f32[1,512], index: 2, kind: input, shape index: {}]   ;;  %s3925_s3 = inlined_call_operand.vmem [shape: bf16[512,256], index: 3, kind: input, shape index: {}]   ;;  %s3926_s4 = inlined_call_operand.hbm [shape: f32[1,256], index: 4, kind: input, shape index: {}]   ;;  %s3927_s5 = inlined_call_operand.vmem [shape: bf16[256,64], index: 5, kind: input, shape index: {}]   ;;  %s3928_s6 = inlined_call_operand.vmem [shape: f32[1,64], index: 6, kind: input, shape index: {}]   ;;  %s3929_s7 = inlined_call_operand.vmem [shape: bf16[64,16], index: 7, kind: input, shape index: {}]   ;;  %s3930_s8 = inlined_call_operand.hbm [shape: f32[1,16], index: 8, kind: input, shape index: {}]   ;;  %s3931_s9 = inlined_call_operand.hbm [shape: bf16[16,10], index: 9, kind: input, shape index: {}]   ;;  %s3932_s10 = inlined_call_operand.hbm [shape: f32[1,10], index: 10, kind: input, shape index: {}]   ;;  %s3933_s11 = inlined_call_operand.hbm [shape: bf16[10,16], index: 11, kind: input, shape index: {}]   ;;  %s3934_s12 = inlined_call_operand.hbm [shape: f32[1,16], index: 12, kind: input, shape index: {}]   ;;  %s3935_s13 = inlined_call_operand.hbm [shape: bf16[16,64], index: 13, kind: input, shape index: {}]   ;;  %s3936_s14 = inlined_call_operand.hbm [shape: f32[1,64], index: 14, kind: input, shape index: {}]   ;;  %s3937_s15 = inlined_call_operand.hbm [shape: bf16[64,256], index: 15, kind: input, shape index: {}]   ;;  %s3938_s16 = inlined_call_operand.hbm [shape: f32[1,256], index: 16, kind: input, shape index: {}]   ;;  %s3939_s17 = inlined_call_operand.hbm [shape: bf16[256,512], index: 17, kind: input, shape index: {}]   ;;  %s3940_s18 = inlined_call_operand.vmem [shape: f32[1,512], index: 18, kind: input, shape index: {}]   ;;  %s3941_s19 = inlined_call_operand.vmem [shape: bf16[512,33], index: 19, kind: input, shape index: {}]   ;;  %s3942_s20 = inlined_call_operand.vmem [shape: f32[1,33], index: 20, kind: input, shape index: {}]   ;;  %s3943_s21 = inlined_call_operand.hbm [shape: f32[16,33], index: 21, kind: output, shape index: {}]  }
   0x1   :  { %3946 = sst [smem:[#allocation35_spill]] %s3922_s0 }
   0x2   :  { %3947 = sst [smem:[#allocation36_spill]] %s3923_s1 }
   0x3   :  { %3948 = sst [smem:[#allocation37_spill]] %s3924_s2 }
   0x4   :  { %3949 = sst [smem:[#allocation38_spill]] %s3925_s3 }
   0x5   :  { %3950 = sst [smem:[#allocation39_spill]] %s3926_s4 }
   0x6   :  { %3951 = sst [smem:[#allocation40_spill]] %s3927_s5 }
   0x7   :  { %26 = vsyncpa [#allocation3], 0 }
   0x8   :  { %27 = vsyncpa [#allocation6], 0 }
   0x9   :  { %28 = vsyncpa [#allocation9], 0 }
   0xa   :  { %29 = vsyncpa [#allocation12], 0 }
   0xb   :  { %30 = vsyncpa [#allocation15], 0 }
   0xc   :  { %31 = vsyncpa [#allocation18], 0 }
   0xd   :  { %32 = vsyncpa [#allocation21], 0 }
   0xe   :  { %33 = vsyncpa [#allocation24], 0 }
   0xf   :  { %34 = vsyncpa [#allocation4], 0  ;;  %s3318_s2 = smov [#allocation5]  }
  0x10   :  { %s52_s25 = sshll.u32 %s3318_s2, 4  ;;  %s53_s25 = int_to_ptr.vmem [resolvable:$true] %s52_s25 }
  0x11   :  { %s3008_s26 = scalar_lea.vmem %s53_s25, 1280  ;;  %p3013_p1 = scmp.lt.s32.totalorder %s53_s25, %s53_s25 }
  0x12   :  { %p3009_p0 = scmp.ne.s32.totalorder %s53_s25, %s3008_s26  ;;  %p3014_p2 = scmp.lt.s32.totalorder %s3008_s26, %s3008_s26 }
  0x14   :  { %p3015_p3 = por %p3014_p2, %p3013_p1 }
  0x16   :  { %p3016_p4 = pnand %p3015_p3, %p3009_p0 }
  0x18   :  { %3019 = shalt.err (!%p3016_p4)
}
  0x19   :  { %s3319_s27 = smov 256   ;;  %s3320_s3 = smov 16  }
  0x1a   :  { %s3952_s0 = sld [smem:[#allocation36_spill]]  ;;  %s3321_s4 = smov [#allocation8]  }
  0x1b   :  { %s77_s30 = sshll.u32 %s3321_s4, 4  ;;  %s3322_s5 = smov [#allocation11]   ;;  %s78_s30 = int_to_ptr.vmem [resolvable:$true] %s77_s30 }
  0x1c   :  { %s102_s22 = sshll.u32 %s3322_s5, 4  ;;  %s3028_s23 = scalar_lea.vmem %s78_s30, 32  ;;  %s103_s22 = int_to_ptr.vmem [resolvable:$true] %s102_s22 }
  0x1d   :  { %p3029_p5 = scmp.ne.s32.totalorder %s78_s30, %s3028_s23  ;;  %p3033_p6 = scmp.lt.s32.totalorder %s78_s30, %s78_s30 }
  0x1e   :  { %p3034_p7 = scmp.lt.s32.totalorder %s3028_s23, %s3028_s23 }
  0x20   :  { %58 = dma.hbm_to_vmem [thread:$0]  %s3952_s0, 1280, %s53_s25, [#allocation6], %s3319_s27, %s3319_s27, %s3320_s3  }
  0x21   :  { %p3035_p8 = por %p3034_p7, %p3033_p6 }
  0x23   :  { %p3036_p9 = pnand %p3035_p8, %p3029_p5 }
  0x25   :  { %3039 = shalt.err (!%p3036_p9)
}
  0x26   :  { %s3953_s2 = sld [smem:[#allocation39_spill]]  ;;  %s3048_s26 = scalar_lea.vmem %s103_s22, 128 }
  0x27   :  { %p3049_p10 = scmp.ne.s32.totalorder %s103_s22, %s3048_s26  ;;  %p3053_p11 = scmp.lt.s32.totalorder %s103_s22, %s103_s22 }
  0x28   :  { %p3054_p12 = scmp.lt.s32.totalorder %s3048_s26, %s3048_s26 }
  0x2a   :  { %p3055_p13 = por %p3054_p12, %p3053_p11 }
  0x2c   :  { %80 = dma.hbm_to_vmem [thread:$0]  %s3953_s2, 32, %s78_s30, [#allocation9]  }
  0x2d   :  { %p3056_p0 = pnand %p3055_p13, %p3049_p10 }
  0x2f   :  { %3059 = shalt.err (!%p3056_p0)
}
  0x30   :  { %s3323_s25 = smov 64   ;;  %s3324_s28 = smov 4  }
  0x31   :  { %108 = dma.hbm_to_vmem [thread:$0]  %s3931_s9, 128, %s103_s22, [#allocation12], %s3323_s25, %s3323_s25, %s3324_s28  }
  0x32   :  { %s3325_s4 = smov [#allocation14]   ;;  %s3326_s23 = smov [#allocation17]  }
  0x33   :  { %s124_s5 = sshll.u32 %s3325_s4, 4  ;;  %s146_s1 = sshll.u32 %s3326_s23, 4  ;;  %s125_s5 = int_to_ptr.vmem [resolvable:$true] %s124_s5  ;;  %s147_s1 = int_to_ptr.vmem [resolvable:$true] %s146_s1 }
  0x34   :  { %s3068_s30 = scalar_lea.vmem %s125_s5, 128  ;;  %p3073_p2 = scmp.lt.s32.totalorder %s125_s5, %s125_s5 }
  0x35   :  { %p3069_p1 = scmp.ne.s32.totalorder %s125_s5, %s3068_s30  ;;  %p3074_p3 = scmp.lt.s32.totalorder %s3068_s30, %s3068_s30 }
  0x37   :  { %p3075_p4 = por %p3074_p3, %p3073_p2 }
  0x39   :  { %p3076_p5 = pnand %p3075_p4, %p3069_p1 }
  0x3b   :  { %3079 = shalt.err (!%p3076_p5)
}
  0x3c   :  { %130 = dma.hbm_to_vmem [thread:$0]  %s3933_s11, 128, %s125_s5, [#allocation15], %s3323_s25, %s3323_s25, %s3324_s28  }
  0x3d   :  { %s3088_s26 = scalar_lea.vmem %s147_s1, 128  ;;  %p3093_p7 = scmp.lt.s32.totalorder %s147_s1, %s147_s1 }
  0x3e   :  { %p3089_p6 = scmp.ne.s32.totalorder %s147_s1, %s3088_s26  ;;  %p3094_p8 = scmp.lt.s32.totalorder %s3088_s26, %s3088_s26 }
  0x40   :  { %p3095_p9 = por %p3094_p8, %p3093_p7 }
  0x42   :  { %p3096_p10 = pnand %p3095_p9, %p3089_p6 }
  0x44   :  { %3099 = shalt.err (!%p3096_p10)
}
  0x45   :  { %152 = dma.hbm_to_vmem [thread:$0]  %s3935_s13, 128, %s147_s1, [#allocation18], %s3323_s25, %s3323_s25, %s3324_s28  }
  0x46   :  { %s3327_s29 = smov [#allocation20]   ;;  %s3328_s4 = smov [#allocation2]  }
  0x47   :  { %s168_s0 = sshll.u32 %s3327_s29, 4  ;;  %s40_s23 = sshll.u32 %s3328_s4, 4  ;;  %s169_s0 = int_to_ptr.vmem [resolvable:$true] %s168_s0  ;;  %s41_s23 = int_to_ptr.vmem [resolvable:$true] %s40_s23 }
  0x48   :  { %s3108_s30 = scalar_lea.vmem %s169_s0, 1024  ;;  %p3113_p12 = scmp.lt.s32.totalorder %s169_s0, %s169_s0 }
  0x49   :  { %p3109_p11 = scmp.ne.s32.totalorder %s169_s0, %s3108_s30  ;;  %p3114_p13 = scmp.lt.s32.totalorder %s3108_s30, %s3108_s30 }
  0x4b   :  { %p3115_p0 = por %p3114_p13, %p3113_p12 }
  0x4d   :  { %p3116_p1 = pnand %p3115_p0, %p3109_p11 }
  0x4f   :  { %3119 = shalt.err (!%p3116_p1)
}
  0x50   :  { %s3329_s11 = smov 128   ;;  %s3330_s5 = smov 8  }
  0x51   :  { %174 = dma.hbm_to_vmem [thread:$0]  %s3937_s15, 1024, %s169_s0, [#allocation21], %s3329_s11, %s3329_s11, %s3330_s5  }
  0x52   :  { %s3128_s13 = scalar_lea.vmem %s41_s23, 256  ;;  %p3133_p3 = scmp.lt.s32.totalorder %s41_s23, %s41_s23 }
  0x53   :  { %p3129_p2 = scmp.ne.s32.totalorder %s41_s23, %s3128_s13  ;;  %p3134_p4 = scmp.lt.s32.totalorder %s3128_s13, %s3128_s13 }
  0x55   :  { %p3135_p5 = por %p3134_p4, %p3133_p3 }
  0x57   :  { %p3136_p6 = pnand %p3135_p5, %p3129_p2 }
  0x59   :  { %3139 = shalt.err (!%p3136_p6)
}
  0x5a   :  { %s3954_s1 = sld [smem:[#allocation35_spill]]  ;;  %s3331_s26 = smov [#allocation7]  }
  0x5b   :  { %s65_s9 = sshll.u32 %s3331_s26, 4  ;;  %s3332_s22 = smov [#allocation10]   ;;  %s66_s9 = int_to_ptr.vmem [resolvable:$true] %s65_s9 }
  0x5c   :  { %s93_s15 = sshll.u32 %s3332_s22, 4  ;;  %s3148_s29 = scalar_lea.vmem %s66_s9, 64  ;;  %s94_s15 = int_to_ptr.vmem [resolvable:$true] %s93_s15 }
  0x5d   :  { %p3149_p7 = scmp.ne.s32.totalorder %s66_s9, %s3148_s29  ;;  %p3153_p8 = scmp.lt.s32.totalorder %s66_s9, %s66_s9 }
  0x5e   :  { %p3154_p9 = scmp.lt.s32.totalorder %s3148_s29, %s3148_s29 }
  0x60   :  { %46 = dma.hbm_to_vmem [thread:$0]  %s3954_s1, 256, %s41_s23, [#allocation3], %s3329_s11, %s3329_s11, %s3330_s5  }
  0x61   :  { %p3155_p10 = por %p3154_p9, %p3153_p8 }
  0x63   :  { %p3156_p11 = pnand %p3155_p10, %p3149_p7 }
  0x65   :  { %3159 = shalt.err (!%p3156_p11)
}
  0x66   :  { %s3955_s30 = sld [smem:[#allocation37_spill]]  ;;  %s3168_s24 = scalar_lea.vmem %s94_s15, 16 }
  0x67   :  { %p3169_p12 = scmp.ne.s32.totalorder %s94_s15, %s3168_s24  ;;  %s3172_s23 = scalar_lea.vmem %s94_s15, 32 }
  0x68   :  { %p3173_p13 = scmp.lt.s32.totalorder %s94_s15, %s94_s15  ;;  %p3174_p0 = scmp.lt.s32.totalorder %s3172_s23, %s3168_s24 }
  0x6a   :  { %p3175_p1 = por %p3174_p0, %p3173_p13 }
  0x6c   :  { %68 = dma.hbm_to_vmem [thread:$0]  %s3955_s30, 64, %s66_s9, [#allocation6]  }
  0x6d   :  { %p3176_p2 = pnand %p3175_p1, %p3169_p12 }
  0x6f   :  { %3179 = shalt.err (!%p3176_p2)
}
  0x70   :  { %96 = dma.hbm_to_vmem [thread:$0]  %s3930_s8, 16, %s94_s15, [#allocation9]  }
  0x71   :  { %s3333_s25 = smov [#allocation13]   ;;  %s3334_s1 = smov [#allocation16]  }
  0x72   :  { %s115_s28 = sshll.u32 %s3333_s25, 4  ;;  %s137_s26 = sshll.u32 %s3334_s1, 4  ;;  %s116_s28 = int_to_ptr.vmem [resolvable:$true] %s115_s28  ;;  %s138_s26 = int_to_ptr.vmem [resolvable:$true] %s137_s26 }
  0x73   :  { %s3188_s22 = scalar_lea.vmem %s116_s28, 16  ;;  %s3192_s9 = scalar_lea.vmem %s116_s28, 32 }
  0x74   :  { %p3189_p3 = scmp.ne.s32.totalorder %s116_s28, %s3188_s22  ;;  %p3193_p4 = scmp.lt.s32.totalorder %s116_s28, %s116_s28 }
  0x75   :  { %p3194_p5 = scmp.lt.s32.totalorder %s3192_s9, %s3188_s22 }
  0x77   :  { %p3195_p6 = por %p3194_p5, %p3193_p4 }
  0x79   :  { %p3196_p7 = pnand %p3195_p6, %p3189_p3 }
  0x7b   :  { %3199 = shalt.err (!%p3196_p7)
}
  0x7c   :  { %118 = dma.hbm_to_vmem [thread:$0]  %s3932_s10, 16, %s116_s28, [#allocation12]  }
  0x7d   :  { %s3208_s4 = scalar_lea.vmem %s138_s26, 16  ;;  %s3212_s8 = scalar_lea.vmem %s138_s26, 32 }
  0x7e   :  { %p3209_p8 = scmp.ne.s32.totalorder %s138_s26, %s3208_s4  ;;  %p3213_p9 = scmp.lt.s32.totalorder %s138_s26, %s138_s26 }
  0x7f   :  { %p3214_p10 = scmp.lt.s32.totalorder %s3212_s8, %s3208_s4 }
  0x81   :  { %p3215_p11 = por %p3214_p10, %p3213_p9 }
  0x83   :  { %p3216_p12 = pnand %p3215_p11, %p3209_p8 }
  0x85   :  { %3219 = shalt.err (!%p3216_p12)
}
  0x86   :  { %140 = dma.hbm_to_vmem [thread:$0]  %s3934_s12, 16, %s138_s26, [#allocation15]  }
  0x87   :  { %s3335_s24 = smov [#allocation19]   ;;  %s3336_s2 = smov [#allocation22]  }
  0x88   :  { %s159_s23 = sshll.u32 %s3335_s24, 4  ;;  %s181_s13 = sshll.u32 %s3336_s2, 4  ;;  %s160_s23 = int_to_ptr.vmem [resolvable:$true] %s159_s23  ;;  %s182_s13 = int_to_ptr.vmem [resolvable:$true] %s181_s13 }
  0x89   :  { %s3228_s25 = scalar_lea.vmem %s160_s23, 16  ;;  %s3232_s10 = scalar_lea.vmem %s160_s23, 32 }
  0x8a   :  { %p3229_p13 = scmp.ne.s32.totalorder %s160_s23, %s3228_s25  ;;  %p3233_p0 = scmp.lt.s32.totalorder %s160_s23, %s160_s23 }
  0x8b   :  { %p3234_p1 = scmp.lt.s32.totalorder %s3232_s10, %s3228_s25 }
  0x8d   :  { %p3235_p2 = por %p3234_p1, %p3233_p0 }
  0x8f   :  { %p3236_p3 = pnand %p3235_p2, %p3229_p13 }
  0x91   :  { %3239 = shalt.err (!%p3236_p3)
}
  0x92   :  { %162 = dma.hbm_to_vmem [thread:$0]  %s3936_s14, 16, %s160_s23, [#allocation18]  }
  0x93   :  { %s3248_s22 = scalar_lea.vmem %s182_s13, 32  ;;  %p3253_p5 = scmp.lt.s32.totalorder %s182_s13, %s182_s13 }
  0x94   :  { %p3249_p4 = scmp.ne.s32.totalorder %s182_s13, %s3248_s22  ;;  %p3254_p6 = scmp.lt.s32.totalorder %s3248_s22, %s3248_s22 }
  0x96   :  { %p3255_p7 = por %p3254_p6, %p3253_p5 }
  0x98   :  { %p3256_p8 = pnand %p3255_p7, %p3249_p4 }
  0x9a   :  { %3259 = shalt.err (!%p3256_p8)
}
  0x9b   :  { %184 = dma.hbm_to_vmem [thread:$0]  %s3938_s16, 32, %s182_s13, [#allocation21]  }
  0x9c   :  { %s3337_s9 = smov [#allocation23]  }
  0x9d   :  { %s190_s29 = sshll.u32 %s3337_s9, 4  ;;  %s191_s29 = int_to_ptr.vmem [resolvable:$true] %s190_s29 }
  0x9e   :  { %s3268_s0 = scalar_lea.vmem %s191_s29, 8192  ;;  %p3273_p10 = scmp.lt.s32.totalorder %s191_s29, %s191_s29 }
  0x9f   :  { %p3269_p9 = scmp.ne.s32.totalorder %s191_s29, %s3268_s0  ;;  %p3274_p11 = scmp.lt.s32.totalorder %s3268_s0, %s3268_s0 }
  0xa1   :  { %p3275_p12 = por %p3274_p11, %p3273_p10 }
  0xa3   :  { %p3276_p13 = pnand %p3275_p12, %p3269_p9 }
  0xa5   :  { %3279 = shalt.err (!%p3276_p13)
}
  0xa6   :  { %196 = dma.hbm_to_vmem [thread:$0]  %s3939_s17, 8192, %s191_s29, [#allocation24], %s3319_s27, %s3319_s27, %s3320_s3  }
  0xa7   :  { %3300 = dma.done.wait [#allocation3], 256  }
  0xa8   :  { %3301 = vsyncadd [#allocation3], 4294967040 }
  0xa9   :  { %3302 = dma.done.wait [#allocation6], 1344  }
  0xaa   :  { %3303 = vsyncadd [#allocation6], 4294965952 }
  0xab   :  { %3304 = dma.done.wait [#allocation9], 48  }
  0xac   :  { %3305 = vsyncadd [#allocation9], 4294967248 }
  0xad   :  { %3306 = dma.done.wait [#allocation12], 144  }
  0xae   :  { %3307 = vsyncadd [#allocation12], 4294967152 }
  0xaf   :  { %3308 = dma.done.wait [#allocation15], 144  }
  0xb0   :  { %3309 = vsyncadd [#allocation15], 4294967152 }
  0xb1   :  { %3310 = dma.done.wait [#allocation18], 144  }
  0xb2   :  { %3311 = vsyncadd [#allocation18], 4294967152 }
  0xb3   :  { %3312 = dma.done.wait [#allocation21], 1056  }
  0xb4   :  { %3313 = vsyncadd [#allocation21], 4294966240 }
  0xb5   :  { %3314 = dma.done.wait [#allocation24], 8192  }
  0xb6   :  { %3315 = vsyncadd [#allocation24], 4294959104  ;;  %v3338_v0 = vmov 0   ;;  %vm335_vm0 = vcmask 1040384   ;;  %v257_v1 = vld [vmem:[#allocation5 + $0x40] sm:$0x11] }
  0xb7   :  { %382 = vmatprep.mubr.bf16.mxu0 %v3338_v0  ;;  %425 = vmatprep.mubr.bf16.mxu1 %v3338_v0  ;;  %v337_v2 = vsel %vm335_vm0, 65535, %v3338_v0  ;;  %v258_v3 = vld [vmem:[#allocation5 + $0x48] sm:$0x11]  ;;  %v2387_v4 = vcombine.high %v257_v1, %v257_v1  ;;  %v2386_v6 = vcombine.low %v257_v1, %v257_v1  ;;  %v2729_v8 = vld [vmem:[#allocation5 + $0x24] ss:$16 sps:$4 sm:$0xff]   ;;  %v247_v21 = vld [vmem:[#allocation2 + $0x8] sm:$0xff] }
  0xb8   :  { %v2389_v5 = vcombine.high %v258_v3, %v258_v3  ;;  %v2388_v7 = vcombine.low %v258_v3, %v258_v3  ;;  %v2731_v13 = vld [vmem:[#allocation5 + $0x2c] ss:$16 sps:$4 sm:$0xff]   ;;  %v2733_v14 = vld [vmem:[#allocation5 + $0x20] ss:$16 sps:$4 sm:$0xff]   ;;  %v2734_v15 = vld [vmem:[#allocation5 + $0x28] ss:$16 sps:$4 sm:$0xff]  }
  0xb9   :  { %v342_v9 = vand.u32 %v2387_v4, %v337_v2  ;;  %v339_v11 = vand.u32 %v2386_v6, %v337_v2  ;;  %v2735_v16 = vld [vmem:[#allocation5 + $0x4] ss:$16 sps:$4 sm:$0xff]   ;;  %v2737_v17 = vld [vmem:[#allocation5 + $0xc] ss:$16 sps:$4 sm:$0xff]   ;;  %v2739_v18 = vld [vmem:[#allocation5] ss:$16 sps:$4 sm:$0xff]  }
  0xba   :  { %v348_v10 = vand.u32 %v2389_v5, %v337_v2  ;;  %v345_v12 = vand.u32 %v2388_v7, %v337_v2  ;;  %v2740_v19 = vld [vmem:[#allocation5 + $0x8] ss:$16 sps:$4 sm:$0xff]   ;;  %v246_v20 = vld [vmem:[#allocation2] sm:$0xff]  ;;  %s3956_s27 = sld [smem:[#allocation38_spill]]  ;;  %vm331_vm1 = vcmask 269312   ;;  %vm3340_vm2 = vmmov 0  }
  0xbb   :  { %360 = vmatprep.subr.bf16.mxu0 %v342_v9  ;;  %v248_v24 = vpack.c.bf16 %v247_v21, %v246_v20  ;;  %s3957_s14 = sld [smem:[#allocation40_spill]]  ;;  %vm1154_vm3 = vcmask 523264   ;;  %vm1217_vm4 = vcmask 130048   ;;  %vm1281_vm5 = vcmask 1044480   ;;  %s3341_s24 = smov [#allocation25]  }
  0xbc   :  { %403 = vmatprep.subr.bf16.mxu1 %v348_v10  ;;  %361 = vmatpush1.bf16.msra.mxu0 %v339_v11  ;;  %vm1277_vm6 = vcmask 80896   ;;  %s2359_s23 = sshll.u32 %s3341_s24, 4  ;;  %s2360_s23 = int_to_ptr.vmem [resolvable:$true] %s2359_s23 }
  0xbd   :  { %404 = vmatpush1.bf16.msra.mxu1 %v345_v12  ;;  %362 = vmatprep.subr.bf16.mxu0 %v2729_v8  ;;  %p3285_p1 = scmp.lt.s32.totalorder %s2360_s23, %s2360_s23 }
  0xbe   :  { %405 = vmatprep.subr.bf16.mxu1 %v2731_v13 }
  0xc0   :  { %363 = vmatpush1.bf16.msra.mxu0 %v2733_v14  ;;  %v2743_v22 = vld [vmem:[%s3956_s27 + $0x74] ss:$8 sps:$4 sm:$0xff]   ;;  %v2741_v25 = vld [vmem:[%s3956_s27 + $0x70] ss:$8 sps:$4 sm:$0xff]   ;;  %v2749_v27 = vld [vmem:[%s3956_s27 + $0x64] ss:$8 sps:$4 sm:$0xff]  }
  0xc1   :  { %406 = vmatpush1.bf16.msra.mxu1 %v2734_v15  ;;  %364 = vmatprep.subr.bf16.mxu0 %v2735_v16  ;;  %v2746_v23 = vld [vmem:[%s3956_s27 + $0x174] ss:$8 sps:$4 sm:$0xff]   ;;  %v2744_v26 = vld [vmem:[%s3956_s27 + $0x170] ss:$8 sps:$4 sm:$0xff]   ;;  %v2752_v28 = vld [vmem:[%s3956_s27 + $0x164] ss:$8 sps:$4 sm:$0xff]  }
  0xc2   :  { %407 = vmatprep.subr.bf16.mxu1 %v2737_v17  ;;  %v2747_v29 = vld [vmem:[%s3956_s27 + $0x60] ss:$8 sps:$4 sm:$0xff]   ;;  %v2755_v31 = vld [vmem:[%s3956_s27 + $0x54] ss:$8 sps:$4 sm:$0xff]   ;;  %v2753_v33 = vld [vmem:[%s3956_s27 + $0x50] ss:$8 sps:$4 sm:$0xff]  }
  0xc3   :  { %v2750_v30 = vld [vmem:[%s3956_s27 + $0x160] ss:$8 sps:$4 sm:$0xff]   ;;  %v2758_v32 = vld [vmem:[%s3956_s27 + $0x154] ss:$8 sps:$4 sm:$0xff]   ;;  %v2756_v34 = vld [vmem:[%s3956_s27 + $0x150] ss:$8 sps:$4 sm:$0xff]  }
  0xc4   :  { %365 = vmatpush1.bf16.msra.mxu0 %v2739_v18  ;;  %v2761_v35 = vld [vmem:[%s3956_s27 + $0x44] ss:$8 sps:$4 sm:$0xff]   ;;  %v2759_v37 = vld [vmem:[%s3956_s27 + $0x40] ss:$8 sps:$4 sm:$0xff]   ;;  %v2767_v39 = vld [vmem:[%s3956_s27 + $0x34] ss:$8 sps:$4 sm:$0xff]  }
  0xc5   :  { %408 = vmatpush1.bf16.msra.mxu1 %v2740_v19  ;;  %844 = vmatprep.subr.bf16.mxu0 %v2743_v22  ;;  %v2764_v36 = vld [vmem:[%s3956_s27 + $0x144] ss:$8 sps:$4 sm:$0xff]   ;;  %v2762_v38 = vld [vmem:[%s3956_s27 + $0x140] ss:$8 sps:$4 sm:$0xff]   ;;  %v2770_v40 = vld [vmem:[%s3956_s27 + $0x134] ss:$8 sps:$4 sm:$0xff]  }
  0xc6   :  { %887 = vmatprep.subr.bf16.mxu1 %v2746_v23  ;;  %v2765_v41 = vld [vmem:[%s3956_s27 + $0x30] ss:$8 sps:$4 sm:$0xff]   ;;  %v2773_v43 = vld [vmem:[%s3956_s27 + $0x24] ss:$8 sps:$4 sm:$0xff]   ;;  %v2771_v45 = vld [vmem:[%s3956_s27 + $0x20] ss:$8 sps:$4 sm:$0xff]  }
  0xc7   :  { %2390 = vmatmul.mubr.msk.bf16.vlgmr.msra.gmra.mxu0 %vm331_vm1, %v248_v24  ;;  %v2768_v42 = vld [vmem:[%s3956_s27 + $0x130] ss:$8 sps:$4 sm:$0xff]   ;;  %v2776_v44 = vld [vmem:[%s3956_s27 + $0x124] ss:$8 sps:$4 sm:$0xff]   ;;  %v2774_v46 = vld [vmem:[%s3956_s27 + $0x120] ss:$8 sps:$4 sm:$0xff]  }
  0xc8   :  { %2391 = vmatmul.mubr.msk.bf16.vlgmr.msra.gmra.mxu1 %vm331_vm1, %v248_v24  ;;  %845 = vmatpush1.bf16.msra.mxu0 %v2741_v25  ;;  %v2779_v47 = vld [vmem:[%s3956_s27 + $0x14] ss:$8 sps:$4 sm:$0xff]   ;;  %v2777_v49 = vld [vmem:[%s3956_s27 + $0x10] ss:$8 sps:$4 sm:$0xff]   ;;  %v2785_v51 = vld [vmem:[%s3956_s27 + $0x4] ss:$8 sps:$4 sm:$0xff]   ;;  %v261_v25 = vlaneseq }
  0xc9   :  { %888 = vmatpush1.bf16.msra.mxu1 %v2744_v26  ;;  %846 = vmatprep.subr.bf16.mxu0 %v2749_v27  ;;  %v2782_v48 = vld [vmem:[%s3956_s27 + $0x114] ss:$8 sps:$4 sm:$0xff]   ;;  %v2780_v50 = vld [vmem:[%s3956_s27 + $0x110] ss:$8 sps:$4 sm:$0xff]   ;;  %v2788_v52 = vld [vmem:[%s3956_s27 + $0x104] ss:$8 sps:$4 sm:$0xff]  }
  0xca   :  { %889 = vmatprep.subr.bf16.mxu1 %v2752_v28  ;;  %v2783_v53 = vld [vmem:[%s3956_s27] ss:$8 sps:$4 sm:$0xff]   ;;  %v2791_v55 = vld [vmem:[%s3956_s27 + $0xf4] ss:$8 sps:$4 sm:$0xff]   ;;  %v2789_v57 = vld [vmem:[%s3956_s27 + $0xf0] ss:$8 sps:$4 sm:$0xff]  }
  0xcb   :  { %v2786_v54 = vld [vmem:[%s3956_s27 + $0x100] ss:$8 sps:$4 sm:$0xff]   ;;  %v2794_v56 = vld [vmem:[%s3956_s27 + $0x1f4] ss:$8 sps:$4 sm:$0xff]   ;;  %v2792_v58 = vld [vmem:[%s3956_s27 + $0x1f0] ss:$8 sps:$4 sm:$0xff]  }
  0xcc   :  { %847 = vmatpush1.bf16.msra.mxu0 %v2747_v29  ;;  %v2797_v59 = vld [vmem:[%s3956_s27 + $0xe4] ss:$8 sps:$4 sm:$0xff]   ;;  %v2795_v61 = vld [vmem:[%s3956_s27 + $0xe0] ss:$8 sps:$4 sm:$0xff]   ;;  %v2803_v63 = vld [vmem:[%s3956_s27 + $0xd4] ss:$8 sps:$4 sm:$0xff]  }
  0xcd   :  { %890 = vmatpush1.bf16.msra.mxu1 %v2750_v30  ;;  %848 = vmatprep.subr.bf16.mxu0 %v2755_v31  ;;  %v2800_v60 = vld [vmem:[%s3956_s27 + $0x1e4] ss:$8 sps:$4 sm:$0xff]   ;;  %v2798_v62 = vld [vmem:[%s3956_s27 + $0x1e0] ss:$8 sps:$4 sm:$0xff]   ;;  %v2806_v1 = vld [vmem:[%s3956_s27 + $0x1d4] ss:$8 sps:$4 sm:$0xff]  }
  0xce   :  { %891 = vmatprep.subr.bf16.mxu1 %v2758_v32  ;;  %v2801_v2 = vld [vmem:[%s3956_s27 + $0xd0] ss:$8 sps:$4 sm:$0xff]   ;;  %v2809_v4 = vld [vmem:[%s3956_s27 + $0xc4] ss:$8 sps:$4 sm:$0xff]   ;;  %v2807_v6 = vld [vmem:[%s3956_s27 + $0xc0] ss:$8 sps:$4 sm:$0xff]  }
  0xcf   :  { %v2804_v3 = vld [vmem:[%s3956_s27 + $0x1d0] ss:$8 sps:$4 sm:$0xff]   ;;  %v2812_v5 = vld [vmem:[%s3956_s27 + $0x1c4] ss:$8 sps:$4 sm:$0xff]   ;;  %v2810_v7 = vld [vmem:[%s3956_s27 + $0x1c0] ss:$8 sps:$4 sm:$0xff]  }
  0xd0   :  { %849 = vmatpush1.bf16.msra.mxu0 %v2753_v33  ;;  %v2815_v8 = vld [vmem:[%s3956_s27 + $0xb4] ss:$8 sps:$4 sm:$0xff]   ;;  %v2813_v10 = vld [vmem:[%s3956_s27 + $0xb0] ss:$8 sps:$4 sm:$0xff]   ;;  %v2821_v12 = vld [vmem:[%s3956_s27 + $0xa4] ss:$8 sps:$4 sm:$0xff]  }
  0xd1   :  { %892 = vmatpush1.bf16.msra.mxu1 %v2756_v34  ;;  %850 = vmatprep.subr.bf16.mxu0 %v2761_v35  ;;  %v2818_v9 = vld [vmem:[%s3956_s27 + $0x1b4] ss:$8 sps:$4 sm:$0xff]   ;;  %v2816_v11 = vld [vmem:[%s3956_s27 + $0x1b0] ss:$8 sps:$4 sm:$0xff]   ;;  %v2824_v13 = vld [vmem:[%s3956_s27 + $0x1a4] ss:$8 sps:$4 sm:$0xff]  }
  0xd2   :  { %893 = vmatprep.subr.bf16.mxu1 %v2764_v36  ;;  %v2819_v14 = vld [vmem:[%s3956_s27 + $0xa0] ss:$8 sps:$4 sm:$0xff]   ;;  %v2827_v16 = vld [vmem:[%s3956_s27 + $0x94] ss:$8 sps:$4 sm:$0xff]   ;;  %v2825_v18 = vld [vmem:[%s3956_s27 + $0x90] ss:$8 sps:$4 sm:$0xff]  }
  0xd3   :  { %v2822_v15 = vld [vmem:[%s3956_s27 + $0x1a0] ss:$8 sps:$4 sm:$0xff]   ;;  %v2830_v17 = vld [vmem:[%s3956_s27 + $0x194] ss:$8 sps:$4 sm:$0xff]   ;;  %v2828_v19 = vld [vmem:[%s3956_s27 + $0x190] ss:$8 sps:$4 sm:$0xff]  }
  0xd4   :  { %851 = vmatpush1.bf16.msra.mxu0 %v2759_v37  ;;  %v2833_v20 = vld [vmem:[%s3956_s27 + $0x84] ss:$8 sps:$4 sm:$0xff]   ;;  %v2831_v22 = vld [vmem:[%s3956_s27 + $0x80] ss:$8 sps:$4 sm:$0xff]   ;;  %v2837_v24 = vld [vmem:[%s3957_s14 + $0x78] sm:$0xff]   ;;  %v3706_v26 = vshrl.u32 %v261_v25, 7 }
  0xd5   :  { %894 = vmatpush1.bf16.msra.mxu1 %v2762_v38  ;;  %852 = vmatprep.subr.bf16.mxu0 %v2767_v39  ;;  %v2836_v21 = vld [vmem:[%s3956_s27 + $0x184] ss:$8 sps:$4 sm:$0xff]   ;;  %v2834_v23 = vld [vmem:[%s3956_s27 + $0x180] ss:$8 sps:$4 sm:$0xff]  }
  0xd6   :  { %895 = vmatprep.subr.bf16.mxu1 %v2770_v40  ;;  %v3709_v27 = vsub.s32 1, %v3706_v26  ;;  %v275_v28 = vsub.s32 3, %v3706_v26  ;;  %v3713_v29 = vsub.s32 0, %v3706_v26  ;;  %v271_v30 = vsub.s32 2, %v3706_v26  ;;  %v259_v31 = vld [vmem:[#allocation7] sm:$0xf] }
  0xd8   :  { %853 = vmatpush1.bf16.msra.mxu0 %v2765_v41  ;;  %v268_v34 = vrot.slane %v259_v31, %v3709_v27  ;;  %v276_v35 = vrot.slane %v259_v31, %v275_v28  ;;  %v264_v36 = vrot.slane %v259_v31, %v3713_v29  ;;  %v272_v37 = vrot.slane %v259_v31, %v271_v30 }
  0xd9   :  { %896 = vmatpush1.bf16.msra.mxu1 %v2768_v42  ;;  %854 = vmatprep.subr.bf16.mxu0 %v2773_v43 }
  0xda   :  { %897 = vmatprep.subr.bf16.mxu1 %v2776_v44 }
  0xdc   :  { %855 = vmatpush1.bf16.msra.mxu0 %v2771_v45 }
  0xdd   :  { %898 = vmatpush1.bf16.msra.mxu1 %v2774_v46  ;;  %856 = vmatprep.subr.bf16.mxu0 %v2779_v47 }
  0xde   :  { %899 = vmatprep.subr.bf16.mxu1 %v2782_v48 }
  0xe0   :  { %857 = vmatpush1.bf16.msra.mxu0 %v2777_v49 }
  0xe1   :  { %900 = vmatpush1.bf16.msra.mxu1 %v2780_v50  ;;  %858 = vmatprep.subr.bf16.mxu0 %v2785_v51 }
  0xe2   :  { %901 = vmatprep.subr.bf16.mxu1 %v2788_v52 }
  0xe4   :  { %859 = vmatpush1.bf16.msra.mxu0 %v2783_v53 }
  0xe5   :  { %902 = vmatpush1.bf16.msra.mxu1 %v2786_v54  ;;  %860 = vmatprep.subr.bf16.mxu0 %v2791_v55 }
  0xe6   :  { %903 = vmatprep.subr.bf16.mxu1 %v2794_v56 }
  0xe8   :  { %861 = vmatpush2.bf16.msra.mxu0 %v2789_v57 }
  0xe9   :  { %904 = vmatpush2.bf16.msra.mxu1 %v2792_v58  ;;  %862 = vmatprep.subr.bf16.mxu0 %v2797_v59 }
  0xea   :  { %905 = vmatprep.subr.bf16.mxu1 %v2800_v60 }
  0xec   :  { %863 = vmatpush2.bf16.msra.mxu0 %v2795_v61 }
  0xed   :  { %906 = vmatpush2.bf16.msra.mxu1 %v2798_v62  ;;  %864 = vmatprep.subr.bf16.mxu0 %v2803_v63  ;;  %v2838_v62 = vld [vmem:[%s3957_s14 + $0x38] sm:$0xff]  }
  0xee   :  { %907 = vmatprep.subr.bf16.mxu1 %v2806_v1 }
  0xf0   :  { %865 = vmatpush2.bf16.msra.mxu0 %v2801_v2  ;;  %v2839_v2 = vld [vmem:[%s3957_s14 + $0x70] sm:$0xff]  }
  0xf1   :  { %908 = vmatpush2.bf16.msra.mxu1 %v2804_v3  ;;  %866 = vmatprep.subr.bf16.mxu0 %v2809_v4  ;;  %v2840_v3 = vld [vmem:[%s3957_s14 + $0x30] sm:$0xff]   ;;  %v2841_v4 = vld [vmem:[%s3957_s14 + $0x68] sm:$0xff]  }
  0xf2   :  { %909 = vmatprep.subr.bf16.mxu1 %v2812_v5  ;;  %v2842_v5 = vld [vmem:[%s3957_s14 + $0x28] sm:$0xff]  }
  0xf4   :  { %867 = vmatpush2.bf16.msra.mxu0 %v2807_v6  ;;  %v2843_v6 = vld [vmem:[%s3957_s14 + $0x60] sm:$0xff]  }
  0xf5   :  { %910 = vmatpush2.bf16.msra.mxu1 %v2810_v7  ;;  %868 = vmatprep.subr.bf16.mxu0 %v2815_v8  ;;  %v2844_v7 = vld [vmem:[%s3957_s14 + $0x20] sm:$0xff]   ;;  %v2845_v8 = vld [vmem:[%s3957_s14 + $0x58] sm:$0xff]  }
  0xf6   :  { %911 = vmatprep.subr.bf16.mxu1 %v2818_v9  ;;  %v2846_v9 = vld [vmem:[%s3957_s14 + $0x18] sm:$0xff]  }
  0xf8   :  { %869 = vmatpush2.bf16.msra.mxu0 %v2813_v10  ;;  %v2847_v10 = vld [vmem:[%s3957_s14 + $0x50] sm:$0xff]  }
  0xf9   :  { %912 = vmatpush2.bf16.msra.mxu1 %v2816_v11  ;;  %870 = vmatprep.subr.bf16.mxu0 %v2821_v12  ;;  %v2848_v11 = vld [vmem:[%s3957_s14 + $0x10] sm:$0xff]   ;;  %v2849_v12 = vld [vmem:[%s3957_s14 + $0x48] sm:$0xff]  }
  0xfa   :  { %913 = vmatprep.subr.bf16.mxu1 %v2824_v13  ;;  %v2850_v13 = vld [vmem:[%s3957_s14 + $0x8] sm:$0xff]  }
  0xfc   :  { %871 = vmatpush2.bf16.msra.mxu0 %v2819_v14  ;;  %v2851_v14 = vld [vmem:[%s3957_s14 + $0x40] sm:$0xff]  }
  0xfd   :  { %914 = vmatpush2.bf16.msra.mxu1 %v2822_v15  ;;  %872 = vmatprep.subr.bf16.mxu0 %v2827_v16  ;;  %v2852_v15 = vld [vmem:[%s3957_s14] sm:$0xff]   ;;  %v3339_v16 = vmov 0.0  }
  0xfe   :  { %915 = vmatprep.subr.bf16.mxu1 %v2830_v17  ;;  %v512_v17 = vld [vmem:[#allocation8] sm:$0x3] }
 0x100   :  { %873 = vmatpush2.bf16.msra.mxu0 %v2825_v18  ;;  %v521_v18 = vrot.slane %v512_v17, %v3709_v27 }
 0x101   :  { %916 = vmatpush2.bf16.msra.mxu1 %v2828_v19  ;;  %874 = vmatprep.subr.bf16.mxu0 %v2833_v20  ;;  %v517_v19 = vrot.slane %v512_v17, %v3713_v29 }
 0x102   :  { %917 = vmatprep.subr.bf16.mxu1 %v2836_v21 }
 0x104   :  { %875 = vmatpush2.bf16.msra.mxu0 %v2831_v22 }
 0x105   :  { %918 = vmatpush2.bf16.msra.mxu1 %v2834_v23  ;;  %2594 = vmatprep.subr.bf16.mxu0 %v2837_v24 }
 0x106   :  { %2671 = vmatprep.subr.bf16.mxu1 %v3339_v16 }
 0x187   :  { %v384_v32 = vpop.f32.mrf.mxu0 }
 0x188   :  { %v427_v33 = vpop.f32.mrf.mxu1  ;;  %v385_v46 = vadd.f32 %v384_v32, %v264_v36 }
 0x189   :  { %v386_v38 = vpop.f32.mrf.mxu0  ;;  %v428_v47 = vadd.f32 %v427_v33, %v272_v37 }
 0x18a   :  { %v429_v39 = vpop.f32.mrf.mxu1  ;;  %v387_v42 = vadd.f32 %v386_v38, %v268_v34  ;;  %v436_v58 = vmax.f32 %v385_v46, 0.0 }
 0x18b   :  { %v388_v40 = vpop.f32.mrf.mxu0  ;;  %v430_v43 = vadd.f32 %v429_v39, %v276_v35  ;;  %v438_v59 = vmax.f32 %v428_v47, 0.0  ;;  %v2853_v47 = vld [vmem:[%s3929_s7 + $0x18] sm:$0xff]  }
 0x18c   :  { %v431_v41 = vpop.f32.mrf.mxu1  ;;  %v389_v44 = vadd.f32 %v388_v40, %v264_v36  ;;  %v437_v54 = vmax.f32 %v387_v42, 0.0 }
 0x18d   :  { %v432_v45 = vadd.f32 %v431_v41, %v272_v37  ;;  %v390_v48 = vpop.f32.mrf.mxu0  ;;  %v439_v55 = vmax.f32 %v430_v43, 0.0 }
 0x18e   :  { %v433_v49 = vpop.f32.mrf.mxu1  ;;  %v391_v50 = vadd.f32 %v390_v48, %v268_v34  ;;  %v440_v52 = vmax.f32 %v389_v44, 0.0  ;;  %v2854_v48 = vld [vmem:[%s3929_s7 + $0x10] sm:$0xff]  }
 0x18f   :  { %v434_v51 = vadd.f32 %v433_v49, %v276_v35  ;;  %v442_v53 = vmax.f32 %v432_v45, 0.0  ;;  %v2855_v49 = vld [vmem:[%s3929_s7 + $0x8] sm:$0xff]  }
 0x190   :  { %v441_v56 = vmax.f32 %v391_v50, 0.0  ;;  %v444_v63 = vpack.c.bf16 %v440_v52, %v436_v58  ;;  %v2856_v50 = vld [vmem:[%s3929_s7] sm:$0xff]  }
 0x191   :  { %v443_v57 = vmax.f32 %v434_v51, 0.0  ;;  %v446_v1 = vpack.c.bf16 %v442_v53, %v438_v59 }
 0x192   :  { %v445_v60 = vpack.c.bf16 %v441_v56, %v437_v54  ;;  %v2456_v54 = vld [vmem:[%s3928_s6] ss:$0 sm:$0xff] }
 0x193   :  { %v447_v61 = vpack.c.bf16 %v443_v57, %v439_v55 }
 0x194   :  { %876 = vmatprep.mubr.bf16.mxu0 %v445_v60 }
 0x195   :  { %919 = vmatprep.mubr.bf16.mxu1 %v447_v61  ;;  %877 = vmatmul.mubr.bf16.vlgmr.msra.gmra.mxu0 %v444_v63  ;;  %v2857_v63 = vld [vmem:[#allocation11] sm:$0xff]  }
 0x196   :  { %920 = vmatmul.mubr.bf16.vlgmr.msra.gmra.mxu1 %v446_v1  ;;  %2595 = vmatpush3.bf16.msra.mxu0 %v2838_v62  ;;  %v2473_v1 = vld [vmem:[#allocation10] ss:$0 sm:$0xff] }
 0x197   :  { %2596 = vmatprep.subr.bf16.mxu0 %v2839_v2  ;;  %2672 = vmatpush3.bf16.msra.mxu1 %v2853_v47  ;;  %v2880_v47 = vld [vmem:[#allocation23 + $0xc4] ss:$16 sps:$4 sm:$0xff]  }
 0x198   :  { %2673 = vmatprep.subr.bf16.mxu1 %v3339_v16  ;;  %2679 = vmatprep.mubr.msk.bf16.mxu1 %vm3340_vm2, %v3339_v16 }
 0x19a   :  { %2597 = vmatpush3.bf16.msra.mxu0 %v2840_v3 }
 0x19b   :  { %2598 = vmatprep.subr.bf16.mxu0 %v2841_v4  ;;  %2674 = vmatpush3.bf16.msra.mxu1 %v2854_v48  ;;  %v2878_v48 = vld [vmem:[#allocation23 + $0xc0] ss:$16 sps:$4 sm:$0xff]  }
 0x19c   :  { %2675 = vmatprep.subr.bf16.mxu1 %v3339_v16 }
 0x19e   :  { %2599 = vmatpush3.bf16.msra.mxu0 %v2842_v5 }
 0x19f   :  { %2600 = vmatprep.subr.bf16.mxu0 %v2843_v6  ;;  %2676 = vmatpush3.bf16.msra.mxu1 %v2855_v49  ;;  %v2886_v49 = vld [vmem:[#allocation23 + $0xa4] ss:$16 sps:$4 sm:$0xff]  }
 0x1a0   :  { %2677 = vmatprep.subr.bf16.mxu1 %v3339_v16 }
 0x1a2   :  { %2601 = vmatpush3.bf16.msra.mxu0 %v2844_v7 }
 0x1a3   :  { %2602 = vmatprep.subr.bf16.mxu0 %v2845_v8  ;;  %2678 = vmatpush3.bf16.msra.mxu1 %v2856_v50  ;;  %v2884_v50 = vld [vmem:[#allocation23 + $0xa0] ss:$16 sps:$4 sm:$0xff]  }
 0x1a4   :  { %2683 = vmatprep.subr.bf16.mxu1 %v3339_v16 }
 0x1a6   :  { %2603 = vmatpush3.bf16.msra.mxu0 %v2846_v9 }
 0x1a7   :  { %2604 = vmatprep.subr.bf16.mxu0 %v2847_v10 }
 0x1aa   :  { %2605 = vmatpush3.bf16.msra.mxu0 %v2848_v11  ;;  %v2858_v11 = vld [vmem:[#allocation14] sm:$0x1f]  }
 0x1ab   :  { %2606 = vmatprep.subr.bf16.mxu0 %v2849_v12  ;;  %v1283_v12 = vsel %vm1281_vm5, %v2858_v11, 0 }
 0x1ae   :  { %2607 = vmatpush3.bf16.msra.mxu0 %v2850_v13 }
 0x1af   :  { %2608 = vmatprep.subr.bf16.mxu0 %v2851_v14  ;;  %v2479_v14 = vld [vmem:[#allocation13] ss:$0 sm:$0xff] }
 0x1b2   :  { %2609 = vmatpush3.bf16.msra.mxu0 %v2852_v15 }
 0x1b3   :  { %2695 = vmatprep.subr.bf16.mxu0 %v3339_v16 }
 0x255   :  { %v878_v20 = vpop.f32.mrf.mxu0 }
 0x256   :  { %v921_v21 = vpop.f32.mrf.mxu1  ;;  %v879_v25 = vadd.f32 %v878_v20, %v517_v19 }
 0x257   :  { %v880_v22 = vpop.f32.mrf.mxu0 }
 0x258   :  { %v923_v23 = vpop.f32.mrf.mxu1  ;;  %v881_v24 = vadd.f32 %v880_v22, %v521_v18  ;;  %v922_v38 = vadd.f32 %v921_v21, %v879_v25  ;;  %v2859_v22 = vld [vmem:[#allocation17] sm:$0xff]   ;;  %v2863_v25 = vld [vmem:[#allocation20 + $0x20] ss:$8 sps:$4 sm:$0xff]  }
 0x259   :  { %v882_v31 = vpop.f32.mrf.mxu0 }
 0x25a   :  { %v925_v32 = vpop.f32.mrf.mxu1  ;;  %v883_v33 = vadd.f32 %v882_v31, %v517_v19  ;;  %v924_v35 = vadd.f32 %v923_v23, %v881_v24  ;;  %v930_v44 = vmax.f32 %v922_v38, 0.0  ;;  %v2860_v23 = vld [vmem:[#allocation20 + $0x30] ss:$8 sps:$4 sm:$0xff]   ;;  %v2865_v24 = vld [vmem:[#allocation20 + $0x24] ss:$8 sps:$4 sm:$0xff]  }
 0x25b   :  { %v884_v34 = vpop.f32.mrf.mxu0  ;;  %v2482_v31 = vld [vmem:[#allocation16] ss:$0 sm:$0xff] }
 0x25c   :  { %v926_v36 = vadd.f32 %v925_v32, %v883_v33  ;;  %v885_v37 = vadd.f32 %v884_v34, %v521_v18  ;;  %v927_v39 = vpop.f32.mrf.mxu1  ;;  %v931_v42 = vmax.f32 %v924_v35, 0.0 }
 0x25e   :  { %v928_v40 = vadd.f32 %v927_v39, %v885_v37  ;;  %v932_v41 = vmax.f32 %v926_v36, 0.0 }
 0x260   :  { %v933_v43 = vmax.f32 %v928_v40, 0.0  ;;  %v934_v46 = vpack.c.bf16 %v932_v41, %v930_v44  ;;  %v2868_v40 = vld [vmem:[#allocation20 + $0x14] ss:$8 sps:$4 sm:$0xff]   ;;  %v2866_v41 = vld [vmem:[#allocation20 + $0x10] ss:$8 sps:$4 sm:$0xff]  }
 0x261   :  { %v2872_v44 = vld [vmem:[#allocation23 + $0xe0] ss:$16 sps:$4 sm:$0xff]  }
 0x262   :  { %v935_v45 = vpack.c.bf16 %v933_v43, %v931_v42  ;;  %v2871_v42 = vld [vmem:[#allocation20 + $0x4] ss:$8 sps:$4 sm:$0xff]   ;;  %v2869_v43 = vld [vmem:[#allocation20] ss:$8 sps:$4 sm:$0xff]  }
 0x264   :  { %1103 = vmatprep.mubr.bf16.mxu0 %v935_v45  ;;  %v2874_v45 = vld [vmem:[#allocation23 + $0xe4] ss:$16 sps:$4 sm:$0xff]  }
 0x265   :  { %1104 = vmatmul.mubr.bf16.vlgmr.msra.gmra.mxu0 %v934_v46  ;;  %v2877_v46 = vld [vmem:[#allocation23 + $0xec] ss:$16 sps:$4 sm:$0xff]  }
 0x266   :  { %2697 = vmatprep.mubr.msk.bf16.mxu0 %vm3340_vm2, %v3339_v16  ;;  %2696 = vmatpush3.bf16.msra.mxu0 %v2859_v22  ;;  %v2889_v22 = vld [vmem:[#allocation23 + $0xac] ss:$16 sps:$4 sm:$0xff]  }
 0x267   :  { %1909 = vmatprep.subr.bf16.mxu0 %v2874_v45  ;;  %v2949_v45 = vld [vmem:[#allocation23 + $0x16c] ss:$16 sps:$4 sm:$0xff]  }
 0x325   :  { %v2610_v51 = vpop.f32.mrf.mxu0 }
 0x327   :  { %v2611_v52 = vpop.f32.mrf.mxu0 }
 0x328   :  { %v2612_v53 = vadd.f32 %v2611_v52, %v2610_v51  ;;  %v2892_v51 = vld [vmem:[#allocation23 + $0x84] ss:$16 sps:$4 sm:$0xff]   ;;  %v2890_v52 = vld [vmem:[#allocation23 + $0x80] ss:$16 sps:$4 sm:$0xff]  }
 0x329   :  { %v2613_v55 = vpop.f32.mrf.mxu0 }
 0x32a   :  { %v1106_v57 = vadd.f32 %v2612_v53, %v2456_v54  ;;  %v2898_v53 = vld [vmem:[#allocation23 + $0x64] ss:$16 sps:$4 sm:$0xff]  }
 0x32b   :  { %v2614_v56 = vpop.f32.mrf.mxu0 }
 0x32c   :  { %v2615_v58 = vadd.f32 %v2614_v56, %v2613_v55  ;;  %v1112_v60 = vmax.f32 %v1106_v57, 0.0  ;;  %v2904_v55 = vld [vmem:[#allocation23 + $0x44] ss:$16 sps:$4 sm:$0xff]   ;;  %v2902_v56 = vld [vmem:[#allocation23 + $0x40] ss:$16 sps:$4 sm:$0xff]  }
 0x32d   :  { %v2910_v57 = vld [vmem:[#allocation23 + $0x24] ss:$16 sps:$4 sm:$0xff]  }
 0x32e   :  { %v1109_v59 = vadd.f32 %v2615_v58, %v2456_v54  ;;  %v2896_v54 = vld [vmem:[#allocation23 + $0x60] ss:$16 sps:$4 sm:$0xff]  }
 0x32f   :  { %v2908_v58 = vld [vmem:[#allocation23 + $0x20] ss:$16 sps:$4 sm:$0xff]  }
 0x330   :  { %v1113_v61 = vmax.f32 %v1109_v59, 0.0  ;;  %v2916_v59 = vld [vmem:[#allocation23 + $0x4] ss:$16 sps:$4 sm:$0xff]  }
 0x332   :  { %v1114_v62 = vpack.c.bf16 %v1113_v61, %v1112_v60  ;;  %v2914_v60 = vld [vmem:[#allocation23] ss:$16 sps:$4 sm:$0xff]   ;;  %v2922_v61 = vld [vmem:[#allocation23 + $0x1e4] ss:$16 sps:$4 sm:$0xff]  }
 0x334   :  { %2680 = vmatmul.mubr.msk.bf16.vlgmr.msra.gmra.mxu1 %vm1154_vm3, %v1114_v62  ;;  %v2920_v62 = vld [vmem:[#allocation23 + $0x1e0] ss:$16 sps:$4 sm:$0xff]  }
 0x335   :  { %2685 = vmatprep.mubr.msk.bf16.mxu1 %vm3340_vm2, %v3339_v16  ;;  %2684 = vmatpush3.bf16.msra.mxu1 %v2857_v63  ;;  %v2928_v63 = vld [vmem:[#allocation23 + $0x1c4] ss:$16 sps:$4 sm:$0xff]  }
 0x336   :  { %2689 = vmatprep.subr.bf16.mxu1 %v3339_v16 }
 0x3f4   :  { %v1192_v2 = vpop.f32.mrf.mxu1 }
 0x3f5   :  { %v1193_v4 = vadd.f32 %v2473_v1, %v1192_v2  ;;  %v2934_v2 = vld [vmem:[#allocation23 + $0x1a4] ss:$16 sps:$4 sm:$0xff]  }
 0x3f6   :  { %v2681_v3 = vpop.f32.mrf.mxu1 }
 0x3f7   :  { %v1199_v8 = vmax.f32 %v1193_v4, 0.0  ;;  %v2932_v3 = vld [vmem:[#allocation23 + $0x1a0] ss:$16 sps:$4 sm:$0xff]   ;;  %v2940_v4 = vld [vmem:[#allocation23 + $0x184] ss:$16 sps:$4 sm:$0xff]  }
 0x3f8   :  { %v1195_v5 = vpop.f32.mrf.mxu1 }
 0x3f9   :  { %v1196_v6 = vadd.f32 %v2473_v1, %v1195_v5  ;;  %v2926_v1 = vld [vmem:[#allocation23 + $0x1c0] ss:$16 sps:$4 sm:$0xff]  }
 0x3fa   :  { %v2682_v7 = vpop.f32.mrf.mxu1  ;;  %v2938_v5 = vld [vmem:[#allocation23 + $0x180] ss:$16 sps:$4 sm:$0xff]  }
 0x3fb   :  { %v1200_v9 = vmax.f32 %v1196_v6, 0.0  ;;  %v2946_v6 = vld [vmem:[#allocation23 + $0x164] ss:$16 sps:$4 sm:$0xff]   ;;  %v2944_v7 = vld [vmem:[#allocation23 + $0x160] ss:$16 sps:$4 sm:$0xff]  }
 0x3fd   :  { %v1201_v10 = vpack.c.bf16 %v1200_v9, %v1199_v8  ;;  %v2485_v8 = vld [vmem:[#allocation19] ss:$0 sm:$0xff] }
 0x3ff   :  { %2686 = vmatmul.mubr.msk.bf16.vlgmr.msra.gmra.mxu1 %vm1217_vm4, %v1201_v10 }
 0x400   :  { %2691 = vmatprep.mubr.msk.bf16.mxu1 %vm3340_vm2, %v3339_v16  ;;  %2690 = vmatpush3.bf16.msra.mxu1 %v1283_v12  ;;  %v2862_v16 = vld [vmem:[#allocation20 + $0x34] ss:$8 sps:$4 sm:$0xff]  }
 0x401   :  { %1462 = vmatprep.subr.bf16.mxu1 %v2862_v16  ;;  %v2895_v16 = vld [vmem:[#allocation23 + $0x8c] ss:$16 sps:$4 sm:$0xff]  }
 0x4bf   :  { %v1255_v13 = vpop.f32.mrf.mxu1 }
 0x4c0   :  { %v1256_v18 = vadd.f32 %v2479_v14, %v1255_v13 }
 0x4c1   :  { %v2687_v15 = vpop.f32.mrf.mxu1 }
 0x4c3   :  { %v1258_v17 = vpop.f32.mrf.mxu1 }
 0x4c4   :  { %v1259_v19 = vadd.f32 %v2479_v14, %v1258_v17 }
 0x4c5   :  { %v2688_v20 = vpop.f32.mrf.mxu1 }
 0x4c6   :  { %v1262_v21 = vpack.c.bf16 %v1259_v19, %v1256_v18  ;;  %v2875_v18 = vld [vmem:[#allocation23 + $0xe8] ss:$16 sps:$4 sm:$0xff]   ;;  %v2883_v20 = vld [vmem:[#allocation23 + $0xcc] ss:$16 sps:$4 sm:$0xff]  }
 0x4c8   :  { %2692 = vmatmul.mubr.msk.bf16.vlgmr.msra.gmra.mxu1 %vm1277_vm6, %v1262_v21  ;;  %v2881_v21 = vld [vmem:[#allocation23 + $0xc8] ss:$16 sps:$4 sm:$0xff]  }
 0x4c9   :  { %1486 = vmatprep.mubr.bf16.mxu1 %v3338_v0  ;;  %1463 = vmatpush1.bf16.msra.mxu1 %v2860_v23  ;;  %v2887_v23 = vld [vmem:[#allocation23 + $0xa8] ss:$16 sps:$4 sm:$0xff]  }
 0x4ca   :  { %1464 = vmatprep.subr.bf16.mxu1 %v2865_v24  ;;  %v2893_v24 = vld [vmem:[#allocation23 + $0x88] ss:$16 sps:$4 sm:$0xff]  }
 0x4cd   :  { %1465 = vmatpush1.bf16.msra.mxu1 %v2863_v25  ;;  %v2901_v25 = vld [vmem:[#allocation23 + $0x6c] ss:$16 sps:$4 sm:$0xff]  }
 0x4ce   :  { %1466 = vmatprep.subr.bf16.mxu1 %v2868_v40  ;;  %v2929_v40 = vld [vmem:[#allocation23 + $0x1c8] ss:$16 sps:$4 sm:$0xff]  }
 0x4d1   :  { %1467 = vmatpush1.bf16.msra.mxu1 %v2866_v41  ;;  %v2937_v41 = vld [vmem:[#allocation23 + $0x1ac] ss:$16 sps:$4 sm:$0xff]  }
 0x4d2   :  { %1468 = vmatprep.subr.bf16.mxu1 %v2871_v42  ;;  %v2935_v42 = vld [vmem:[#allocation23 + $0x1a8] ss:$16 sps:$4 sm:$0xff]  }
 0x4d5   :  { %1469 = vmatpush1.bf16.msra.mxu1 %v2869_v43  ;;  %v2943_v43 = vld [vmem:[#allocation23 + $0x18c] ss:$16 sps:$4 sm:$0xff]  }
 0x4d6   :  { %1952 = vmatprep.subr.bf16.mxu1 %v2877_v46  ;;  %v2947_v46 = vld [vmem:[#allocation23 + $0x168] ss:$16 sps:$4 sm:$0xff]  }
 0x588   :  { %v1319_v32 = vpop.f32.mrf.mxu1 }
 0x589   :  { %v1320_v34 = vadd.f32 %v2482_v31, %v1319_v32  ;;  %v2907_v32 = vld [vmem:[#allocation23 + $0x4c] ss:$16 sps:$4 sm:$0xff]  }
 0x58a   :  { %v2693_v33 = vpop.f32.mrf.mxu1 }
 0x58b   :  { %v1326_v38 = vmax.f32 %v1320_v34, 0.0  ;;  %v2905_v33 = vld [vmem:[#allocation23 + $0x48] ss:$16 sps:$4 sm:$0xff]   ;;  %v2913_v34 = vld [vmem:[#allocation23 + $0x2c] ss:$16 sps:$4 sm:$0xff]  }
 0x58c   :  { %v1322_v35 = vpop.f32.mrf.mxu1 }
 0x58d   :  { %v1323_v36 = vadd.f32 %v2482_v31, %v1322_v35  ;;  %v2899_v31 = vld [vmem:[#allocation23 + $0x68] ss:$16 sps:$4 sm:$0xff]  }
 0x58e   :  { %v2694_v37 = vpop.f32.mrf.mxu1  ;;  %v2911_v35 = vld [vmem:[#allocation23 + $0x28] ss:$16 sps:$4 sm:$0xff]  }
 0x58f   :  { %v1327_v39 = vmax.f32 %v1323_v36, 0.0  ;;  %v2919_v36 = vld [vmem:[#allocation23 + $0xc] ss:$16 sps:$4 sm:$0xff]   ;;  %v2917_v37 = vld [vmem:[#allocation23 + $0x8] ss:$16 sps:$4 sm:$0xff]  }
 0x591   :  { %v1328_v0 = vpack.c.bf16 %v1327_v39, %v1326_v38  ;;  %v2925_v38 = vld [vmem:[#allocation23 + $0x1ec] ss:$16 sps:$4 sm:$0xff]   ;;  %v2923_v39 = vld [vmem:[#allocation23 + $0x1e8] ss:$16 sps:$4 sm:$0xff]  }
 0x593   :  { %2698 = vmatmul.mubr.msk.bf16.vlgmr.msra.gmra.mxu0 %vm1217_vm4, %v1328_v0  ;;  %v2931_v0 = vld [vmem:[#allocation23 + $0x1cc] ss:$16 sps:$4 sm:$0xff]  }
 0x594   :  { %1910 = vmatpush1.bf16.msra.mxu0 %v2872_v44  ;;  %v2941_v44 = vld [vmem:[#allocation23 + $0x188] ss:$16 sps:$4 sm:$0xff]  }
 0x595   :  { %1911 = vmatprep.subr.bf16.mxu0 %v2880_v47  ;;  %v2952_v47 = vld [vmem:[#allocation23 + $0x144] ss:$16 sps:$4 sm:$0xff]  }
 0x598   :  { %1912 = vmatpush1.bf16.msra.mxu0 %v2878_v48  ;;  %v2955_v48 = vld [vmem:[#allocation23 + $0x14c] ss:$16 sps:$4 sm:$0xff]  }
 0x599   :  { %1913 = vmatprep.subr.bf16.mxu0 %v2886_v49  ;;  %v2950_v49 = vld [vmem:[#allocation23 + $0x140] ss:$16 sps:$4 sm:$0xff]  }
 0x59c   :  { %1914 = vmatpush1.bf16.msra.mxu0 %v2884_v50  ;;  %v2953_v50 = vld [vmem:[#allocation23 + $0x148] ss:$16 sps:$4 sm:$0xff]  }
 0x59d   :  { %1915 = vmatprep.subr.bf16.mxu0 %v2892_v51  ;;  %v2958_v51 = vld [vmem:[#allocation23 + $0x124] ss:$16 sps:$4 sm:$0xff]  }
 0x5a0   :  { %1916 = vmatpush1.bf16.msra.mxu0 %v2890_v52  ;;  %v2961_v52 = vld [vmem:[#allocation23 + $0x12c] ss:$16 sps:$4 sm:$0xff]  }
 0x5a1   :  { %1917 = vmatprep.subr.bf16.mxu0 %v2898_v53  ;;  %v2956_v53 = vld [vmem:[#allocation23 + $0x120] ss:$16 sps:$4 sm:$0xff]  }
 0x5a4   :  { %1918 = vmatpush1.bf16.msra.mxu0 %v2896_v54  ;;  %v2959_v54 = vld [vmem:[#allocation23 + $0x128] ss:$16 sps:$4 sm:$0xff]  }
 0x5a5   :  { %1919 = vmatprep.subr.bf16.mxu0 %v2904_v55  ;;  %v2964_v55 = vld [vmem:[#allocation23 + $0x104] ss:$16 sps:$4 sm:$0xff]  }
 0x5a8   :  { %1920 = vmatpush1.bf16.msra.mxu0 %v2902_v56  ;;  %v2967_v56 = vld [vmem:[#allocation23 + $0x10c] ss:$16 sps:$4 sm:$0xff]  }
 0x5a9   :  { %1921 = vmatprep.subr.bf16.mxu0 %v2910_v57  ;;  %v2962_v57 = vld [vmem:[#allocation23 + $0x100] ss:$16 sps:$4 sm:$0xff]  }
 0x5ac   :  { %1922 = vmatpush1.bf16.msra.mxu0 %v2908_v58  ;;  %v2965_v58 = vld [vmem:[#allocation23 + $0x108] ss:$16 sps:$4 sm:$0xff]  }
 0x5ad   :  { %1923 = vmatprep.subr.bf16.mxu0 %v2916_v59  ;;  %v2968_v59 = vld [vmem:[%s3941_s19 + $0x78] sm:$0xff]  }
 0x5b0   :  { %1924 = vmatpush1.bf16.msra.mxu0 %v2914_v60  ;;  %v2969_v60 = vld [vmem:[%s3941_s19 + $0xf8] sm:$0xff]  }
 0x5b1   :  { %1925 = vmatprep.subr.bf16.mxu0 %v2922_v61  ;;  %v1399_v61 = vld [vmem:[#allocation22] sm:$0x3] }
 0x5b4   :  { %1926 = vmatpush2.bf16.msra.mxu0 %v2920_v62 }
 0x5b5   :  { %1927 = vmatprep.subr.bf16.mxu0 %v2928_v63  ;;  %v1408_v63 = vrot.slane %v1399_v61, %v3709_v27 }
 0x5b8   :  { %1928 = vmatpush2.bf16.msra.mxu0 %v2926_v1  ;;  %v1404_v1 = vrot.slane %v1399_v61, %v3713_v29 }
 0x5b9   :  { %1929 = vmatprep.subr.bf16.mxu0 %v2934_v2 }
 0x5bc   :  { %1930 = vmatpush2.bf16.msra.mxu0 %v2932_v3 }
 0x5bd   :  { %1931 = vmatprep.subr.bf16.mxu0 %v2940_v4 }
 0x5c0   :  { %1932 = vmatpush2.bf16.msra.mxu0 %v2938_v5 }
 0x5c1   :  { %1933 = vmatprep.subr.bf16.mxu0 %v2946_v6 }
 0x5c4   :  { %1934 = vmatpush2.bf16.msra.mxu0 %v2944_v7 }
 0x5c5   :  { %1935 = vmatprep.subr.bf16.mxu0 %v2952_v47  ;;  %v2998_v47 = vld [vmem:[%s3941_s19] sm:$0xff]  }
 0x5c8   :  { %1936 = vmatpush2.bf16.msra.mxu0 %v2950_v49  ;;  %v1567_v49 = vld [vmem:[%s3940_s18] sm:$0xf] }
 0x5c9   :  { %1937 = vmatprep.subr.bf16.mxu0 %v2958_v51 }
 0x5cc   :  { %1938 = vmatpush2.bf16.msra.mxu0 %v2956_v53  ;;  %v1584_v53 = vrot.slane %v1567_v49, %v275_v28 }
 0x5cd   :  { %1939 = vmatprep.subr.bf16.mxu0 %v2964_v55  ;;  %v1580_v55 = vrot.slane %v1567_v49, %v271_v30 }
 0x5d0   :  { %1940 = vmatpush2.bf16.msra.mxu0 %v2962_v57 }
 0x5d1   :  { %2627 = vmatprep.subr.bf16.mxu0 %v2968_v59 }
 0x653   :  { %v1381_v9 = vpop.f32.mrf.mxu0 }
 0x654   :  { %v1382_v11 = vadd.f32 %v2485_v8, %v1381_v9 }
 0x655   :  { %v2699_v10 = vpop.f32.mrf.mxu0 }
 0x656   :  { %v1388_v15 = vmax.f32 %v1382_v11, 0.0 }
 0x657   :  { %v1384_v12 = vpop.f32.mrf.mxu0 }
 0x658   :  { %v1385_v13 = vadd.f32 %v2485_v8, %v1384_v12 }
 0x659   :  { %v2700_v14 = vpop.f32.mrf.mxu0 }
 0x65a   :  { %v1389_v17 = vmax.f32 %v1385_v13, 0.0  ;;  %v2970_v14 = vld [vmem:[%s3941_s19 + $0x38] sm:$0xff]  }
 0x65c   :  { %v1390_v19 = vpack.c.bf16 %v1389_v17, %v1388_v15  ;;  %v2971_v15 = vld [vmem:[%s3941_s19 + $0xb8] sm:$0xff]  }
 0x65e   :  { %2496 = vmatmul.mubr.msk.bf16.vlgmr.msra.gmra.mxu1 %vm1154_vm3, %v1390_v19  ;;  %v2973_v19 = vld [vmem:[%s3941_s19 + $0xf0] sm:$0xff]  }
 0x65f   :  { %1953 = vmatpush1.bf16.msra.mxu1 %v2875_v18  ;;  %v2972_v18 = vld [vmem:[%s3941_s19 + $0x70] sm:$0xff]  }
 0x660   :  { %1954 = vmatprep.subr.bf16.mxu1 %v2883_v20  ;;  %v2974_v20 = vld [vmem:[%s3941_s19 + $0x30] sm:$0xff]  }
 0x663   :  { %1955 = vmatpush1.bf16.msra.mxu1 %v2881_v21  ;;  %v2975_v21 = vld [vmem:[%s3941_s19 + $0xb0] sm:$0xff]  }
 0x664   :  { %1956 = vmatprep.subr.bf16.mxu1 %v2889_v22  ;;  %v2976_v22 = vld [vmem:[%s3941_s19 + $0x68] sm:$0xff]  }
 0x667   :  { %1957 = vmatpush1.bf16.msra.mxu1 %v2887_v23  ;;  %v2977_v23 = vld [vmem:[%s3941_s19 + $0xe8] sm:$0xff]  }
 0x668   :  { %1958 = vmatprep.subr.bf16.mxu1 %v2895_v16  ;;  %v2978_v16 = vld [vmem:[%s3941_s19 + $0x28] sm:$0xff]  }
 0x66b   :  { %1959 = vmatpush1.bf16.msra.mxu1 %v2893_v24  ;;  %v2979_v24 = vld [vmem:[%s3941_s19 + $0xa8] sm:$0xff]  }
 0x66c   :  { %1960 = vmatprep.subr.bf16.mxu1 %v2901_v25  ;;  %v2980_v25 = vld [vmem:[%s3941_s19 + $0x60] sm:$0xff]  }
 0x66f   :  { %1961 = vmatpush1.bf16.msra.mxu1 %v2899_v31  ;;  %v2981_v31 = vld [vmem:[%s3941_s19 + $0xe0] sm:$0xff]  }
 0x670   :  { %1962 = vmatprep.subr.bf16.mxu1 %v2907_v32  ;;  %v2982_v32 = vld [vmem:[%s3941_s19 + $0x20] sm:$0xff]  }
 0x673   :  { %1963 = vmatpush1.bf16.msra.mxu1 %v2905_v33  ;;  %v2983_v33 = vld [vmem:[%s3941_s19 + $0xa0] sm:$0xff]  }
 0x674   :  { %1964 = vmatprep.subr.bf16.mxu1 %v2913_v34  ;;  %v2984_v34 = vld [vmem:[%s3941_s19 + $0x58] sm:$0xff]  }
 0x677   :  { %1965 = vmatpush1.bf16.msra.mxu1 %v2911_v35  ;;  %v2985_v35 = vld [vmem:[%s3941_s19 + $0xd8] sm:$0xff]  }
 0x678   :  { %1966 = vmatprep.subr.bf16.mxu1 %v2919_v36  ;;  %v2986_v36 = vld [vmem:[%s3941_s19 + $0x18] sm:$0xff]  }
 0x67b   :  { %1967 = vmatpush1.bf16.msra.mxu1 %v2917_v37  ;;  %v2987_v37 = vld [vmem:[%s3941_s19 + $0x98] sm:$0xff]  }
 0x67c   :  { %1968 = vmatprep.subr.bf16.mxu1 %v2925_v38  ;;  %v2988_v38 = vld [vmem:[%s3941_s19 + $0x50] sm:$0xff]  }
 0x67f   :  { %1969 = vmatpush2.bf16.msra.mxu1 %v2923_v39  ;;  %v2989_v39 = vld [vmem:[%s3941_s19 + $0xd0] sm:$0xff]  }
 0x680   :  { %1970 = vmatprep.subr.bf16.mxu1 %v2931_v0  ;;  %v2990_v0 = vld [vmem:[%s3941_s19 + $0x10] sm:$0xff]  }
 0x683   :  { %1971 = vmatpush2.bf16.msra.mxu1 %v2929_v40  ;;  %v2991_v40 = vld [vmem:[%s3941_s19 + $0x90] sm:$0xff]  }
 0x684   :  { %1972 = vmatprep.subr.bf16.mxu1 %v2937_v41  ;;  %v2992_v41 = vld [vmem:[%s3941_s19 + $0x48] sm:$0xff]  }
 0x687   :  { %1973 = vmatpush2.bf16.msra.mxu1 %v2935_v42  ;;  %v2993_v42 = vld [vmem:[%s3941_s19 + $0xc8] sm:$0xff]  }
 0x688   :  { %1974 = vmatprep.subr.bf16.mxu1 %v2943_v43  ;;  %v2994_v43 = vld [vmem:[%s3941_s19 + $0x8] sm:$0xff]  }
 0x68b   :  { %1975 = vmatpush2.bf16.msra.mxu1 %v2941_v44  ;;  %v2995_v44 = vld [vmem:[%s3941_s19 + $0x88] sm:$0xff]  }
 0x68c   :  { %1976 = vmatprep.subr.bf16.mxu1 %v2949_v45  ;;  %v2996_v45 = vld [vmem:[%s3941_s19 + $0x40] sm:$0xff]  }
 0x68f   :  { %1977 = vmatpush2.bf16.msra.mxu1 %v2947_v46  ;;  %v2997_v46 = vld [vmem:[%s3941_s19 + $0xc0] sm:$0xff]  }
 0x690   :  { %1978 = vmatprep.subr.bf16.mxu1 %v2955_v48  ;;  %v2999_v48 = vld [vmem:[%s3941_s19 + $0x80] sm:$0xff]  }
 0x693   :  { %1979 = vmatpush2.bf16.msra.mxu1 %v2953_v50 }
 0x694   :  { %1980 = vmatprep.subr.bf16.mxu1 %v2961_v52  ;;  %v1576_v52 = vrot.slane %v1567_v49, %v3709_v27 }
 0x697   :  { %1981 = vmatpush2.bf16.msra.mxu1 %v2959_v54  ;;  %v1572_v54 = vrot.slane %v1567_v49, %v3713_v29 }
 0x698   :  { %1982 = vmatprep.subr.bf16.mxu1 %v2967_v56 }
 0x69b   :  { %1983 = vmatpush2.bf16.msra.mxu1 %v2965_v58 }
 0x69c   :  { %2649 = vmatprep.subr.bf16.mxu1 %v2969_v60 }
 0x71e   :  { %v1488_v62 = vpop.f32.mrf.mxu1 }
 0x71f   :  { %v1489_v6 = vadd.f32 %v1488_v62, %v1404_v1 }
 0x720   :  { %v1490_v2 = vpop.f32.mrf.mxu1 }
 0x721   :  { %v1491_v4 = vadd.f32 %v1490_v2, %v1408_v63  ;;  %v1497_v12 = vmax.f32 %v1489_v6, 0.0 }
 0x722   :  { %v1492_v3 = vpop.f32.mrf.mxu1 }
 0x723   :  { %v1493_v5 = vadd.f32 %v1492_v3, %v1404_v1  ;;  %v1498_v10 = vmax.f32 %v1491_v4, 0.0 }
 0x724   :  { %v1494_v7 = vpop.f32.mrf.mxu1 }
 0x725   :  { %v1495_v8 = vadd.f32 %v1494_v7, %v1408_v63  ;;  %v1499_v9 = vmax.f32 %v1493_v5, 0.0 }
 0x727   :  { %v1500_v11 = vmax.f32 %v1495_v8, 0.0  ;;  %v1501_v17 = vpack.c.bf16 %v1499_v9, %v1497_v12 }
 0x729   :  { %v1502_v13 = vpack.c.bf16 %v1500_v11, %v1498_v10 }
 0x72b   :  { %1941 = vmatprep.mubr.bf16.mxu0 %v1502_v13  ;;  %1984 = vmatprep.mubr.bf16.mxu1 %v1502_v13 }
 0x72c   :  { %1942 = vmatmul.mubr.bf16.vlgmr.msra.gmra.mxu0 %v1501_v17  ;;  %1985 = vmatmul.mubr.bf16.vlgmr.msra.gmra.mxu1 %v1501_v17  ;;  %v2561_v17 = vld [vmem:[%s3942_s20] ss:$0 sm:$0xff]  ;;  %s3280_s20 = scalar_lea.vmem %s2360_s23, 256 }
 0x72d   :  { %2628 = vmatpush3.bf16.msra.mxu0 %v2970_v14  ;;  %2650 = vmatpush3.bf16.msra.mxu1 %v2971_v15  ;;  %p3281_p0 = scmp.ne.s32.totalorder %s2360_s23, %s3280_s20  ;;  %p3286_p2 = scmp.lt.s32.totalorder %s3280_s20, %s3280_s20 }
 0x72e   :  { %2629 = vmatprep.subr.bf16.mxu0 %v2972_v18  ;;  %2651 = vmatprep.subr.bf16.mxu1 %v2973_v19 }
 0x72f   :  { %p3287_p3 = por %p3286_p2, %p3285_p1 }
 0x731   :  { %2630 = vmatpush3.bf16.msra.mxu0 %v2974_v20  ;;  %2652 = vmatpush3.bf16.msra.mxu1 %v2975_v21  ;;  %p3288_p4 = pnand %p3287_p3, %p3281_p0 }
 0x732   :  { %2631 = vmatprep.subr.bf16.mxu0 %v2976_v22  ;;  %2653 = vmatprep.subr.bf16.mxu1 %v2977_v23 }
 0x735   :  { %2632 = vmatpush3.bf16.msra.mxu0 %v2978_v16  ;;  %2654 = vmatpush3.bf16.msra.mxu1 %v2979_v24 }
 0x736   :  { %2633 = vmatprep.subr.bf16.mxu0 %v2980_v25  ;;  %2655 = vmatprep.subr.bf16.mxu1 %v2981_v31 }
 0x739   :  { %2634 = vmatpush3.bf16.msra.mxu0 %v2982_v32  ;;  %2656 = vmatpush3.bf16.msra.mxu1 %v2983_v33 }
 0x73a   :  { %2635 = vmatprep.subr.bf16.mxu0 %v2984_v34  ;;  %2657 = vmatprep.subr.bf16.mxu1 %v2985_v35 }
 0x73d   :  { %2636 = vmatpush3.bf16.msra.mxu0 %v2986_v36  ;;  %2658 = vmatpush3.bf16.msra.mxu1 %v2987_v37 }
 0x73e   :  { %2637 = vmatprep.subr.bf16.mxu0 %v2988_v38  ;;  %2659 = vmatprep.subr.bf16.mxu1 %v2989_v39 }
 0x741   :  { %2638 = vmatpush3.bf16.msra.mxu0 %v2990_v0  ;;  %2660 = vmatpush3.bf16.msra.mxu1 %v2991_v40 }
 0x742   :  { %2639 = vmatprep.subr.bf16.mxu0 %v2992_v41  ;;  %2661 = vmatprep.subr.bf16.mxu1 %v2993_v42 }
 0x745   :  { %2640 = vmatpush3.bf16.msra.mxu0 %v2994_v43  ;;  %2662 = vmatpush3.bf16.msra.mxu1 %v2995_v44 }
 0x746   :  { %2641 = vmatprep.subr.bf16.mxu0 %v2996_v45  ;;  %2663 = vmatprep.subr.bf16.mxu1 %v2997_v46 }
 0x749   :  { %2642 = vmatpush3.bf16.msra.mxu0 %v2998_v47  ;;  %2664 = vmatpush3.bf16.msra.mxu1 %v2999_v48 }
 0x7ec   :  { %v1943_v50 = vpop.f32.mrf.mxu0  ;;  %v1986_v51 = vpop.f32.mrf.mxu1 }
 0x7ed   :  { %v1944_v1 = vadd.f32 %v1943_v50, %v1572_v54  ;;  %v1987_v2 = vadd.f32 %v1986_v51, %v1580_v55 }
 0x7ee   :  { %v1945_v56 = vpop.f32.mrf.mxu0  ;;  %v1988_v57 = vpop.f32.mrf.mxu1 }
 0x7ef   :  { %v1946_v60 = vadd.f32 %v1945_v56, %v1576_v52  ;;  %v1989_v61 = vadd.f32 %v1988_v57, %v1584_v53  ;;  %v1995_v8 = vmax.f32 %v1944_v1, 0.0  ;;  %v1997_v9 = vmax.f32 %v1987_v2, 0.0 }
 0x7f0   :  { %v1947_v58 = vpop.f32.mrf.mxu0  ;;  %v1990_v59 = vpop.f32.mrf.mxu1 }
 0x7f1   :  { %v1948_v62 = vadd.f32 %v1947_v58, %v1572_v54  ;;  %v1991_v63 = vadd.f32 %v1990_v59, %v1580_v55  ;;  %v1996_v29 = vmax.f32 %v1946_v60, 0.0  ;;  %v1998_v7 = vmax.f32 %v1989_v61, 0.0 }
 0x7f2   :  { %v1949_v3 = vpop.f32.mrf.mxu0  ;;  %v1992_v27 = vpop.f32.mrf.mxu1 }
 0x7f3   :  { %v1950_v4 = vadd.f32 %v1949_v3, %v1576_v52  ;;  %v1993_v5 = vadd.f32 %v1992_v27, %v1584_v53  ;;  %v1999_v28 = vmax.f32 %v1948_v62, 0.0  ;;  %v2001_v6 = vmax.f32 %v1991_v63, 0.0 }
 0x7f5   :  { %v2000_v26 = vmax.f32 %v1950_v4, 0.0  ;;  %v2002_v30 = vmax.f32 %v1993_v5, 0.0  ;;  %v2003_v12 = vpack.c.bf16 %v1999_v28, %v1995_v8  ;;  %v2005_v13 = vpack.c.bf16 %v2001_v6, %v1997_v9 }
 0x7f7   :  { %v2004_v10 = vpack.c.bf16 %v2000_v26, %v1996_v29  ;;  %v2006_v11 = vpack.c.bf16 %v2002_v30, %v1998_v7 }
 0x7f9   :  { %2302 = vmatprep.mubr.bf16.mxu0 %v2004_v10  ;;  %2343 = vmatprep.mubr.bf16.mxu1 %v2006_v11 }
 0x7fa   :  { %2303 = vmatmul.mubr.bf16.vlgmr.msra.gmra.mxu0 %v2003_v12  ;;  %2344 = vmatmul.mubr.bf16.vlgmr.msra.gmra.mxu1 %v2005_v13 }
 0x8ba   :  { %v2643_v14 = vpop.f32.mrf.mxu0  ;;  %v2665_v15 = vpop.f32.mrf.mxu1 }
 0x8bc   :  { %v2644_v18 = vpop.f32.mrf.mxu0  ;;  %v2666_v19 = vpop.f32.mrf.mxu1 }
 0x8bd   :  { %v2645_v20 = vadd.f32 %v2644_v18, %v2643_v14  ;;  %v2667_v16 = vadd.f32 %v2666_v19, %v2665_v15 }
 0x8be   :  { %v2646_v21 = vpop.f32.mrf.mxu0  ;;  %v2668_v22 = vpop.f32.mrf.mxu1 }
 0x8bf   :  { %v2305_v23 = vadd.f32 %v2645_v20, %v2561_v17 }
 0x8c0   :  { %v2647_v24 = vpop.f32.mrf.mxu0  ;;  %v2669_v25 = vpop.f32.mrf.mxu1 }
 0x8c1   :  { %v2346_v31 = vadd.f32 %v2667_v16, %v2305_v23  ;;  %v2648_v32 = vadd.f32 %v2647_v24, %v2646_v21  ;;  %v2670_v34 = vadd.f32 %v2669_v25, %v2668_v22 }
 0x8c3   :  { %2352 = vst.msk [vmem:[#allocation25] sm:$0xff] %vm331_vm1, %v2346_v31  ;;  %v2308_v33 = vadd.f32 %v2648_v32, %v2561_v17 }
 0x8c5   :  { %v2349_v35 = vadd.f32 %v2670_v34, %v2308_v33 }
 0x8c7   :  { %2353 = vst.msk [vmem:[#allocation25 + $0x8] sm:$0xff] %vm331_vm1, %v2349_v35 }
 0x8c8   :  { %3291 = shalt.err (!%p3288_p4)
}
 0x8c9   :  { %2365 = dma.vmem_to_hbm [thread:$0]  %s2360_s23, 256, %s3943_s21, [#allocation4], %s3329_s11, %s3329_s11, %s3330_s5  }
 0x8ca   :  { %3316 = dma.done.wait [#allocation4], 256  }
 0x8cb   :  { %3317 = vsyncadd [#allocation4], 4294967040 }
 0x8cc   :  { %2369 = vsyncpa [#allocation3], 1 }
 0x8cd   :  { %2370 = vsyncpa [#allocation6], 1 }
 0x8ce   :  { %2371 = vsyncpa [#allocation9], 1 }
 0x8cf   :  { %2372 = vsyncpa [#allocation12], 1 }
 0x8d0   :  { %2373 = vsyncpa [#allocation15], 1 }
 0x8d1   :  { %2374 = vsyncpa [#allocation18], 1 }
 0x8d2   :  { %2375 = vsyncpa [#allocation21], 1 }
 0x8d3   :  { %2376 = vsyncpa [#allocation24], 1 }
 0x8d4   :  { %2377 = vsyncpa [#allocation4], 1 }

</bundles_post_ra>
